<compile_context>
chip_gen: v5e
topology: v5e:2x2
jax: 0.10.0
libtpu: 0.0.40
codegen_flags: <defaults>
</compile_context>

<pallas_src>
import functools

import jax
import jax.numpy as jnp
from jax.experimental import pallas as pl
from jax.experimental.pallas import tpu as pltpu


# ------------------------------ fused kernel ------------------------------- #

def _fused_forward_kernel(
        alphas_ref,                       # SMEM (1, 3)  PReLU alphas
        x_ref,                            # VMEM (B*H, W) f32, B row-stacked images
        b1_ref, c1_ref, pw1_ref, ph1_ref,   # conv1 bands/bias + pool1 matrices
        b2_ref, c2_ref, pw2_ref, ph2_ref,   # conv2 bands/bias + pool2 matrices
        b3_ref, c3_ref,                      # conv3 bands/bias
        aw_ref, ah_ref,                      # adaptive avg-pool matrices
        wl_ref, bl_ref,                      # fused linear (padded to 128 lanes)
        o_ref,                               # VMEM (B, PAD_OUT) f32
        *, heights):                         # (H1, H2, H3) per-image heights
    f32 = jnp.float32
    bf16 = jnp.bfloat16

    def dot(a, b):
        # bf16 MXU inputs, f32 accumulation (review: v5e/v6e/v7x bf16-native MXU).
        return jnp.dot(a.astype(bf16), b.astype(bf16), preferred_element_type=f32)

    def shifted(x, direction, h_img):
        # direction -1: "row above" (out[i] = x[i-1]); +1: "row below" (x[i+1]).
        # pltpu.roll == jnp.roll semantics; per-image zero padding is restored by
        # masking the rows that wrapped across an image boundary.
        rows = x.shape[0]
        ridx = jax.lax.broadcasted_iota(jnp.int32, x.shape, 0) % h_img
        if direction < 0:
            y = pltpu.roll(x, 1, 0)                     # y[i] = x[i-1]
            return jnp.where(ridx == 0, 0.0, y)
        y = pltpu.roll(x, rows - 1, 0)                  # y[i] = x[i+1]
        return jnp.where(ridx == h_img - 1, 0.0, y)

    def conv3x3(x, band_ref, bias_ref, h_img):
        # Channel-minor (rows, W*Cin) -> (rows, W*Cout); W-direction zero padding
        # is folded into the banded matrices, H-direction padding via shifted().
        y = dot(x, band_ref[1])                             # kh = 1 (centre row)
        y = y + dot(shifted(x, -1, h_img), band_ref[0])     # kh = 0 (row above)
        y = y + dot(shifted(x, +1, h_img), band_ref[2])     # kh = 2 (row below)
        return y + bias_ref[...]

    def maxpool2(y, pw_ref, ph_ref):
        # W direction: even/odd channel-block selection matmuls + elementwise max.
        col = jnp.maximum(dot(y, pw_ref[0]), dot(y, pw_ref[1]))
        # H direction: roll+max (XLU/VPU), then ONE block-diagonal even-row select.
        rows = col.shape[0]
        rowmax = jnp.maximum(col, pltpu.roll(col, rows - 1, 0))   # max(row i, i+1)
        return dot(ph_ref[...], rowmax)

    def prelu(y, a):
        return jnp.where(y >= 0.0, y, a * y)

    h1_img, h2_img, h3_img = heights
    x = x_ref[...]                                                   # (B*H, W)

    h1 = prelu(maxpool2(conv3x3(x, b1_ref, c1_ref, h1_img), pw1_ref, ph1_ref),
               alphas_ref[0, 0])                                     # (B*H/2, (W/2)*8)
    h2 = prelu(maxpool2(conv3x3(h1, b2_ref, c2_ref, h2_img), pw2_ref, ph2_ref),
               alphas_ref[0, 1])                                     # (B*H/4, (W/4)*16)
    h3 = prelu(conv3x3(h2, b3_ref, c3_ref, h3_img), alphas_ref[0, 2])  # (B*H/4, (W/4)*32)

    col = dot(h3, aw_ref[...])        # adaptive average over W -> (B*H/4, 2*32)
    r0 = dot(ah_ref[0], col)          # adaptive average over H, top half -> (B, 64)
    r1 = dot(ah_ref[1], col)          #                          bottom half -> (B, 64)

    # Fused Linear (flatten permutation + output padding folded into wl/bl).
    o_ref[...] = dot(r0, wl_ref[0]) + dot(r1, wl_ref[1]) + bl_ref[...]


# ------------------------------ host wrapper ------------------------------- #

def conv_forward(params, s_nchw, *, images_per_step=8):
    """Equivalent of Conv.forward. s_nchw: (N, 1, H, W) float -> (N, output_size)."""
    f32 = jnp.float32
    bf16 = jnp.bfloat16
    n, cin, H, W = s_nchw.shape
    assert cin == 1, "Conv module expects a single input channel"
    # TODO(synk): AdaptiveAvgPool2d(2) with overlapping regions (odd spatial dims
    # after the two max-pools) is not implemented.
    assert H % 8 == 0 and W % 8 == 0, (
        "This kernel requires H and W to be multiples of 8 so that the two "
        "max-pools leave even spatial dims for AdaptiveAvgPool2d(2).")

    # ----- batch tiling: B images per grid step, row-stacked along sublanes ----
    B = max(1, min(int(images_per_step), n))
    n_pad = ((n + B - 1) // B) * B
    x = s_nchw.astype(f32).reshape(n, H, W)
    if n_pad != n:
        x = jnp.concatenate([x, jnp.zeros((n_pad - n, H, W), f32)], axis=0)
    x = x.reshape(n_pad * H, W)            # contiguous (N*H, W) slab in HBM
    n_steps = n_pad // B

    H1, W1 = H, W
    H2, W2 = H1 // 2, W1 // 2
    H3, W3 = H2 // 2, W2 // 2

    # ----- weight-side preprocessing (a few KiB; done once per call) ----------
    def band_mats(w, Wl):
        # w: (Cout, Cin, 3, 3) OIHW -> (3, Wl*Cin, Wl*Cout) banded matrices for the
        # channel-minor (rows, W*C) layout; W-direction zero padding folded in.
        mats = []
        for kh in range(3):
            m = None
            for kw in range(3):
                blk = jnp.kron(jnp.eye(Wl, k=-(kw - 1), dtype=f32),
                               jnp.transpose(w[:, :, kh, kw]).astype(f32))
                m = blk if m is None else m + blk
            mats.append(m)
        return jnp.stack(mats).astype(bf16)

    def bias_row(b, Wl):
        return jnp.tile(b.astype(f32), Wl).reshape(1, -1)     # lane = j*Cout + co

    def pool_w_mats(Wl, Cl):
        # Even/odd W-column (channel-block) selection for the 2x2 stride-2 pool.
        eye_w = jnp.eye(Wl, dtype=f32)
        eye_c = jnp.eye(Cl, dtype=f32)
        return jnp.stack([jnp.kron(eye_w[:, 0::2], eye_c),
                          jnp.kron(eye_w[:, 1::2], eye_c)]).astype(bf16)

    def pool_h_even(Hl):
        # Block-diagonal even-row selection for the B row-stacked images.
        sel = jnp.eye(Hl, dtype=f32)[0::2, :]                  # (Hl/2, Hl)
        return jnp.kron(jnp.eye(B, dtype=f32), sel).astype(bf16)

    b1m = band_mats(params["w1"], W1); c1b = bias_row(params["b1"], W1)
    pw1 = pool_w_mats(W1, 8);  ph1 = pool_h_even(H1)
    b2m = band_mats(params["w2"], W2); c2b = bias_row(params["b2"], W2)
    pw2 = pool_w_mats(W2, 16); ph2 = pool_h_even(H2)
    b3m = band_mats(params["w3"], W3); c3b = bias_row(params["b3"], W3)

    # AdaptiveAvgPool2d(2): exact half regions (H3, W3 even).
    g_w = (jnp.arange(W3)[:, None] // (W3 // 2) == jnp.arange(2)[None, :]).astype(f32)
    aw = jnp.kron(g_w * (2.0 / W3), jnp.eye(32, dtype=f32)).astype(bf16)   # (W3*32, 64)
    g_h = (jnp.arange(H3)[None, :] // (H3 // 2) == jnp.arange(2)[:, None]).astype(f32)
    ah = jnp.stack(
        [jnp.kron(jnp.eye(B, dtype=f32), (g_h[k] * (2.0 / H3)).reshape(1, H3))
         for k in range(2)]).astype(bf16)                                   # (2, B, B*H3)

    # Linear: fold PyTorch's (C, H, W) channel-major flatten permutation into the
    # weight; pad the output dim to a full 128-lane slab for unmasked stores.
    out_dim = params["wl"].shape[0]
    pad_out = max(128, ((out_dim + 127) // 128) * 128)
    wlt = jnp.transpose(params["wl"].astype(f32))                           # (128, out)
    lane = jnp.arange(64)
    w_idx, c_idx = lane // 32, lane % 32
    wl_rows = []
    for h in range(2):
        src = c_idx * 4 + h * 2 + w_idx                                     # torch flat idx
        wl_rows.append(jnp.pad(wlt[src, :], ((0, 0), (0, pad_out - out_dim))))
    wlm = jnp.stack(wl_rows).astype(bf16)                                   # (2, 64, pad)
    blr = jnp.pad(params["bl"].astype(f32), (0, pad_out - out_dim)).reshape(1, pad_out)

    alphas = jnp.stack([params["a1"], params["a2"], params["a3"]])
    alphas = alphas.astype(f32).reshape(1, 3)

    weight_ops = (b1m, c1b, pw1, ph1,
                  b2m, c2b, pw2, ph2,
                  b3m, c3b,
                  aw, ah, wlm, blr)

    def _resident_spec(a):
        # Full-array VMEM block with a constant block index: fetched once and kept
        # resident across the batch grid.
        nd = a.ndim
        return pl.BlockSpec(a.shape, lambda g, _nd=nd: (0,) * _nd)

    in_specs = (
        [pl.BlockSpec((1, 3), lambda g: (0, 0),
                      memory_space=pltpu.MemorySpace.SMEM),        # PReLU alphas
         pl.BlockSpec((B * H, W), lambda g: (g, 0))]               # B stacked images
        + [_resident_spec(a) for a in weight_ops])

    # Advisory cost estimate (review item): flops of all per-step matmuls.
    mm_shapes = (
        [(B * H1, W1 * 1,  W1 * 8)] * 3 +        # conv1 taps
        [(B * H1, W1 * 8,  W2 * 8)] * 2 +        # pool1 W even/odd
        [(B * H2, B * H1,  W2 * 8)] +            # pool1 H even-row select
        [(B * H2, W2 * 8,  W2 * 16)] * 3 +       # conv2 taps
        [(B * H2, W2 * 16, W3 * 16)] * 2 +       # pool2 W even/odd
        [(B * H3, B * H2,  W3 * 16)] +           # pool2 H even-row select
        [(B * H3, W3 * 16, W3 * 32)] * 3 +       # conv3 taps
        [(B * H3, W3 * 32, 64)] +                # adaptive avg over W
        [(B, B * H3, 64)] * 2 +                  # adaptive avg over H
        [(B, 64, pad_out)] * 2)                  # fused linear
    step_flops = sum(2 * m * k * nn for m, k, nn in mm_shapes)
    bytes_accessed = int(x.size * 4
                         + sum(a.size * a.dtype.itemsize for a in weight_ops)
                         + alphas.size * 4 + n_pad * pad_out * 4)
    cost = pl.CostEstimate(flops=int(step_flops * n_steps),
                           transcendentals=0,
                           bytes_accessed=bytes_accessed)

    kernel = functools.partial(_fused_forward_kernel, heights=(H1, H2, H3))

    out = pl.pallas_call(
        kernel,
        out_shape=jax.ShapeDtypeStruct((n_pad, pad_out), jnp.float32),
        grid=(n_steps,),
        in_specs=in_specs,
        out_specs=pl.BlockSpec((B, pad_out), lambda g: (g, 0)),
        compiler_params=pltpu.CompilerParams(
            dimension_semantics=("parallel",)),
        cost_estimate=cost,
    )(alphas, x, *weight_ops)

    return out[:n, :out_dim]


# ------------------------------- parameters -------------------------------- #

def init_params(key, input_size=(1, 16, 16), output_size=10):
    """Parameters in PyTorch layouts: conv (Cout,Cin,3,3), linear (out,in)."""
    keys = jax.random.split(key, 8)

    def u(k, shape, fan_in):
        bound = 1.0 / (float(fan_in) ** 0.5)
        return jax.random.uniform(k, shape, jnp.float32, -bound, bound)

    length = 32 * 2 * 2     # AdaptiveAvgPool2d(2) fixes the flatten length
    return {
        "w1": u(keys[0], (8, input_size[0], 3, 3), 9 * input_size[0]),
        "b1": u(keys[1], (8,), 9 * input_size[0]),
        "w2": u(keys[2], (16, 8, 3, 3), 9 * 8),
        "b2": u(keys[3], (16,), 9 * 8),
        "w3": u(keys[4], (32, 16, 3, 3), 9 * 16),
        "b3": u(keys[5], (32,), 9 * 16),
        "wl": u(keys[6], (output_size, length), length),
        "bl": u(keys[7], (output_size,), length),
        # nn.PReLU() default: one shared parameter initialised to 0.25.
        "a1": jnp.array(0.25, jnp.float32),
        "a2": jnp.array(0.25, jnp.float32),
        "a3": jnp.array(0.25, jnp.float32),
    }


# -------------------------- pure-JAX reference ----------------------------- #

def _reference_forward(params, s_nchw):
    """Plain-XLA reference (high precision) used only for self-verification."""
    hi = jax.lax.Precision.HIGHEST
    x = s_nchw.astype(jnp.float32)

    def conv(x, w, b):
        y = jax.lax.conv_general_dilated(
            x, w.astype(jnp.float32), window_strides=(1, 1),
            padding=((1, 1), (1, 1)),
            dimension_numbers=("NCHW", "OIHW", "NCHW"), precision=hi)
        return y + b.reshape(1, -1, 1, 1)

    def maxpool(x):
        return jax.lax.reduce_window(x, -jnp.inf, jax.lax.max,
                                     (1, 1, 2, 2), (1, 1, 2, 2), "VALID")

    def prelu(x, a):
        return jnp.where(x >= 0, x, a * x)

    h = prelu(maxpool(conv(x, params["w1"], params["b1"])), params["a1"])
    h = prelu(maxpool(conv(h, params["w2"], params["b2"])), params["a2"])
    h = prelu(conv(h, params["w3"], params["b3"]), params["a3"])
    n, c, hh, ww = h.shape
    h = h.reshape(n, c, 2, hh // 2, 2, ww // 2).mean(axis=(3, 5))   # adaptive 2x2
    feats = h.reshape(n, -1)                                        # (N, C*2*2)
    return jnp.dot(feats, params["wl"].T, precision=hi) + params["bl"]


# ---------------------------------- main ------------------------------------ #

if __name__ == "__main__":
    key = jax.random.PRNGKey(0)
    pkey, xkey = jax.random.split(key)

    input_size = (1, 16, 16)     # (C, H, W), as in the torch module
    output_size = 10
    batch = 32                   # 8 images/grid-step -> 4 steps (>= 2 for v7x TCs)

    params = init_params(pkey, input_size=input_size, output_size=output_size)
    x = jax.random.uniform(xkey, (batch,) + input_size, dtype=jnp.float32)  # NCHW

    fwd = jax.jit(functools.partial(conv_forward, images_per_step=8))
    logits = jax.block_until_ready(fwd(params, x))

    assert logits.shape == (batch, output_size)
    assert bool(jnp.all(jnp.isfinite(logits)))

    ref = _reference_forward(params, x)
    err = float(jnp.max(jnp.abs(logits - ref)))
    # Tolerance covers bf16 matmul inputs (f32 accumulation); a wrong shift/pool
    # direction would produce errors orders of magnitude larger.
    assert err < 2.5e-2, f"kernel/reference mismatch: max abs err = {err}"

    print("KERNEL_OK")
</pallas_src>

<mosaic_0001>
module attributes {stable_mosaic.version = 11 : i64} {
  func.func @_fused_forward_kernel(%arg0: i32, %arg1: memref<1x3xf32, #tpu.memory_space<smem>>, %arg2: memref<128x16xf32, #tpu.memory_space<vmem>>, %arg3: memref<3x16x128xbf16, #tpu.memory_space<vmem>>, %arg4: memref<1x128xf32, #tpu.memory_space<vmem>>, %arg5: memref<2x128x64xbf16, #tpu.memory_space<vmem>>, %arg6: memref<64x128xbf16, #tpu.memory_space<vmem>>, %arg7: memref<3x64x128xbf16, #tpu.memory_space<vmem>>, %arg8: memref<1x128xf32, #tpu.memory_space<vmem>>, %arg9: memref<2x128x64xbf16, #tpu.memory_space<vmem>>, %arg10: memref<32x64xbf16, #tpu.memory_space<vmem>>, %arg11: memref<3x64x128xbf16, #tpu.memory_space<vmem>>, %arg12: memref<1x128xf32, #tpu.memory_space<vmem>>, %arg13: memref<128x64xbf16, #tpu.memory_space<vmem>>, %arg14: memref<2x8x32xbf16, #tpu.memory_space<vmem>>, %arg15: memref<2x64x128xbf16, #tpu.memory_space<vmem>>, %arg16: memref<1x128xf32, #tpu.memory_space<vmem>>, %arg17: memref<8x128xf32, #tpu.memory_space<vmem>>) attributes {dimension_semantics = [#tpu.dimension_semantics<parallel>], iteration_bounds = array<i64: 4>, scalar_prefetch = 0 : i64, scratch_operands = 0 : i64, tpu.core_type = #tpu.core_type<tc>, window_params = [{transform_indices = @transform_0, window_bounds = array<i64: 1, 3>}, {transform_indices = @transform_1, window_bounds = array<i64: 128, 16>}, {pipeline_mode = #tpu.pipeline_mode<synchronous>, transform_indices = @transform_2, window_bounds = array<i64: 3, 16, 128>}, {pipeline_mode = #tpu.pipeline_mode<synchronous>, transform_indices = @transform_3, window_bounds = array<i64: 1, 128>}, {pipeline_mode = #tpu.pipeline_mode<synchronous>, transform_indices = @transform_4, window_bounds = array<i64: 2, 128, 64>}, {pipeline_mode = #tpu.pipeline_mode<synchronous>, transform_indices = @transform_5, window_bounds = array<i64: 64, 128>}, {pipeline_mode = #tpu.pipeline_mode<synchronous>, transform_indices = @transform_6, window_bounds = array<i64: 3, 64, 128>}, {pipeline_mode = #tpu.pipeline_mode<synchronous>, transform_indices = @transform_7, window_bounds = array<i64: 1, 128>}, {pipeline_mode = #tpu.pipeline_mode<synchronous>, transform_indices = @transform_8, window_bounds = array<i64: 2, 128, 64>}, {pipeline_mode = #tpu.pipeline_mode<synchronous>, transform_indices = @transform_9, window_bounds = array<i64: 32, 64>}, {pipeline_mode = #tpu.pipeline_mode<synchronous>, transform_indices = @transform_10, window_bounds = array<i64: 3, 64, 128>}, {pipeline_mode = #tpu.pipeline_mode<synchronous>, transform_indices = @transform_11, window_bounds = array<i64: 1, 128>}, {pipeline_mode = #tpu.pipeline_mode<synchronous>, transform_indices = @transform_12, window_bounds = array<i64: 128, 64>}, {pipeline_mode = #tpu.pipeline_mode<synchronous>, transform_indices = @transform_13, window_bounds = array<i64: 2, 8, 32>}, {pipeline_mode = #tpu.pipeline_mode<synchronous>, transform_indices = @transform_14, window_bounds = array<i64: 2, 64, 128>}, {pipeline_mode = #tpu.pipeline_mode<synchronous>, transform_indices = @transform_15, window_bounds = array<i64: 1, 128>}, {transform_indices = @transform_16, window_bounds = array<i64: 8, 128>}]} {
    %c0 = arith.constant 0 : index
    %c0_0 = arith.constant 0 : index
    %0 = vector.load %arg2[%c0, %c0_0] : memref<128x16xf32, #tpu.memory_space<vmem>>, vector<128x16xf32>
    %c1 = arith.constant 1 : index
    %c0_1 = arith.constant 0 : index
    %c0_2 = arith.constant 0 : index
    %1 = vector.load %arg3[%c1, %c0_1, %c0_2] : memref<3x16x128xbf16, #tpu.memory_space<vmem>>, vector<1x16x128xbf16>
    %2 = vector.shape_cast %1 : vector<1x16x128xbf16> to vector<16x128xbf16>
    %3 = arith.truncf %0 : vector<128x16xf32> to vector<128x16xbf16>
    %cst = arith.constant dense<0.000000e+00> : vector<128x128xf32>
    %4 = tpu.matmul %3, %2, %cst {dimension_numbers = #tpu.dot_dimension_numbers<[1], [0], [0], [1], [0, 0, 1, 1], [], []>} : vector<128x16xbf16>, vector<16x128xbf16>, vector<128x128xf32> -> vector<128x128xf32>
    %5 = tpu.iota {dimensions = array<i32: 0>} : vector<128x16xi32>
    %c16_i32 = arith.constant 16 : i32
    %c0_i32 = arith.constant 0 : i32
    %6 = arith.cmpi eq, %c16_i32, %c0_i32 : i32
    %c1_i32 = arith.constant 1 : i32
    %7 = arith.select %6, %c1_i32, %c16_i32 : i32
    %8 = vector.broadcast %7 : i32 to vector<128x16xi32>
    %9 = arith.remsi %5, %8 : vector<128x16xi32>
    %c0_i32_3 = arith.constant 0 : i32
    %10 = vector.broadcast %c0_i32_3 : i32 to vector<128x16xi32>
    %11 = arith.cmpi ne, %9, %10 : vector<128x16xi32>
    %c0_i32_4 = arith.constant 0 : i32
    %12 = vector.broadcast %c0_i32_4 : i32 to vector<128x16xi32>
    %13 = arith.cmpi slt, %9, %12 : vector<128x16xi32>
    %c0_i32_5 = arith.constant 0 : i32
    %14 = arith.cmpi slt, %7, %c0_i32_5 : i32
    %15 = vector.broadcast %14 : i1 to vector<128x16xi1>
    %16 = vector.broadcast %15 : vector<128x16xi1> to vector<128x16xi1>
    %17 = arith.xori %13, %16 : vector<128x16xi1>
    %18 = arith.andi %17, %11 : vector<128x16xi1>
    %19 = vector.broadcast %7 : i32 to vector<128x16xi32>
    %20 = arith.addi %9, %19 : vector<128x16xi32>
    %21 = arith.select %18, %20, %9 : vector<128x16xi1>, vector<128x16xi32>
    %c1_i32_6 = arith.constant 1 : i32
    %22 = tpu.dynamic_rotate %0 by %c1_i32_6 dim 0 : vector<128x16xf32>, i32 -> vector<128x16xf32>
    %c0_i32_7 = arith.constant 0 : i32
    %23 = vector.broadcast %c0_i32_7 : i32 to vector<128x16xi32>
    %24 = arith.cmpi eq, %21, %23 : vector<128x16xi32>
    %cst_8 = arith.constant 0.000000e+00 : f32
    %25 = vector.broadcast %cst_8 : f32 to vector<128x16xf32>
    %26 = arith.select %24, %25, %22 : vector<128x16xi1>, vector<128x16xf32>
    %c0_9 = arith.constant 0 : index
    %c0_10 = arith.constant 0 : index
    %c0_11 = arith.constant 0 : index
    %27 = vector.load %arg3[%c0_9, %c0_10, %c0_11] : memref<3x16x128xbf16, #tpu.memory_space<vmem>>, vector<1x16x128xbf16>
    %28 = vector.shape_cast %27 : vector<1x16x128xbf16> to vector<16x128xbf16>
    %29 = arith.truncf %26 : vector<128x16xf32> to vector<128x16xbf16>
    %cst_12 = arith.constant dense<0.000000e+00> : vector<128x128xf32>
    %30 = tpu.matmul %29, %28, %cst_12 {dimension_numbers = #tpu.dot_dimension_numbers<[1], [0], [0], [1], [0, 0, 1, 1], [], []>} : vector<128x16xbf16>, vector<16x128xbf16>, vector<128x128xf32> -> vector<128x128xf32>
    %31 = arith.addf %4, %30 : vector<128x128xf32>
    %32 = tpu.iota {dimensions = array<i32: 0>} : vector<128x16xi32>
    %c16_i32_13 = arith.constant 16 : i32
    %c0_i32_14 = arith.constant 0 : i32
    %33 = arith.cmpi eq, %c16_i32_13, %c0_i32_14 : i32
    %c1_i32_15 = arith.constant 1 : i32
    %34 = arith.select %33, %c1_i32_15, %c16_i32_13 : i32
    %35 = vector.broadcast %34 : i32 to vector<128x16xi32>
    %36 = arith.remsi %32, %35 : vector<128x16xi32>
    %c0_i32_16 = arith.constant 0 : i32
    %37 = vector.broadcast %c0_i32_16 : i32 to vector<128x16xi32>
    %38 = arith.cmpi ne, %36, %37 : vector<128x16xi32>
    %c0_i32_17 = arith.constant 0 : i32
    %39 = vector.broadcast %c0_i32_17 : i32 to vector<128x16xi32>
    %40 = arith.cmpi slt, %36, %39 : vector<128x16xi32>
    %c0_i32_18 = arith.constant 0 : i32
    %41 = arith.cmpi slt, %34, %c0_i32_18 : i32
    %42 = vector.broadcast %41 : i1 to vector<128x16xi1>
    %43 = vector.broadcast %42 : vector<128x16xi1> to vector<128x16xi1>
    %44 = arith.xori %40, %43 : vector<128x16xi1>
    %45 = arith.andi %44, %38 : vector<128x16xi1>
    %46 = vector.broadcast %34 : i32 to vector<128x16xi32>
    %47 = arith.addi %36, %46 : vector<128x16xi32>
    %48 = arith.select %45, %47, %36 : vector<128x16xi1>, vector<128x16xi32>
    %c127_i32 = arith.constant 127 : i32
    %49 = tpu.dynamic_rotate %0 by %c127_i32 dim 0 : vector<128x16xf32>, i32 -> vector<128x16xf32>
    %c15_i32 = arith.constant 15 : i32
    %50 = vector.broadcast %c15_i32 : i32 to vector<128x16xi32>
    %51 = arith.cmpi eq, %48, %50 : vector<128x16xi32>
    %cst_19 = arith.constant 0.000000e+00 : f32
    %52 = vector.broadcast %cst_19 : f32 to vector<128x16xf32>
    %53 = arith.select %51, %52, %49 : vector<128x16xi1>, vector<128x16xf32>
    %c2 = arith.constant 2 : index
    %c0_20 = arith.constant 0 : index
    %c0_21 = arith.constant 0 : index
    %54 = vector.load %arg3[%c2, %c0_20, %c0_21] : memref<3x16x128xbf16, #tpu.memory_space<vmem>>, vector<1x16x128xbf16>
    %55 = vector.shape_cast %54 : vector<1x16x128xbf16> to vector<16x128xbf16>
    %56 = arith.truncf %53 : vector<128x16xf32> to vector<128x16xbf16>
    %cst_22 = arith.constant dense<0.000000e+00> : vector<128x128xf32>
    %57 = tpu.matmul %56, %55, %cst_22 {dimension_numbers = #tpu.dot_dimension_numbers<[1], [0], [0], [1], [0, 0, 1, 1], [], []>} : vector<128x16xbf16>, vector<16x128xbf16>, vector<128x128xf32> -> vector<128x128xf32>
    %58 = arith.addf %31, %57 : vector<128x128xf32>
    %c0_23 = arith.constant 0 : index
    %c0_24 = arith.constant 0 : index
    %59 = vector.load %arg4[%c0_23, %c0_24] : memref<1x128xf32, #tpu.memory_space<vmem>>, vector<1x128xf32>
    %60 = vector.broadcast %59 : vector<1x128xf32> to vector<128x128xf32>
    %61 = arith.addf %58, %60 : vector<128x128xf32>
    %c0_25 = arith.constant 0 : index
    %c0_26 = arith.constant 0 : index
    %c0_27 = arith.constant 0 : index
    %62 = vector.load %arg5[%c0_25, %c0_26, %c0_27] : memref<2x128x64xbf16, #tpu.memory_space<vmem>>, vector<1x128x64xbf16>
    %63 = vector.shape_cast %62 : vector<1x128x64xbf16> to vector<128x64xbf16>
    %64 = arith.truncf %61 : vector<128x128xf32> to vector<128x128xbf16>
    %cst_28 = arith.constant dense<0.000000e+00> : vector<128x64xf32>
    %65 = tpu.matmul %64, %63, %cst_28 {dimension_numbers = #tpu.dot_dimension_numbers<[1], [0], [0], [1], [0, 0, 1, 1], [], []>} : vector<128x128xbf16>, vector<128x64xbf16>, vector<128x64xf32> -> vector<128x64xf32>
    %c1_29 = arith.constant 1 : index
    %c0_30 = arith.constant 0 : index
    %c0_31 = arith.constant 0 : index
    %66 = vector.load %arg5[%c1_29, %c0_30, %c0_31] : memref<2x128x64xbf16, #tpu.memory_space<vmem>>, vector<1x128x64xbf16>
    %67 = vector.shape_cast %66 : vector<1x128x64xbf16> to vector<128x64xbf16>
    %68 = arith.truncf %61 : vector<128x128xf32> to vector<128x128xbf16>
    %cst_32 = arith.constant dense<0.000000e+00> : vector<128x64xf32>
    %69 = tpu.matmul %68, %67, %cst_32 {dimension_numbers = #tpu.dot_dimension_numbers<[1], [0], [0], [1], [0, 0, 1, 1], [], []>} : vector<128x128xbf16>, vector<128x64xbf16>, vector<128x64xf32> -> vector<128x64xf32>
    %70 = arith.maximumf %65, %69 : vector<128x64xf32>
    %c127_i32_33 = arith.constant 127 : i32
    %71 = tpu.dynamic_rotate %70 by %c127_i32_33 dim 0 : vector<128x64xf32>, i32 -> vector<128x64xf32>
    %72 = arith.maximumf %70, %71 : vector<128x64xf32>
    %c0_34 = arith.constant 0 : index
    %c0_35 = arith.constant 0 : index
    %73 = vector.load %arg6[%c0_34, %c0_35] : memref<64x128xbf16, #tpu.memory_space<vmem>>, vector<64x128xbf16>
    %74 = arith.truncf %72 : vector<128x64xf32> to vector<128x64xbf16>
    %cst_36 = arith.constant dense<0.000000e+00> : vector<64x64xf32>
    %75 = tpu.matmul %73, %74, %cst_36 {dimension_numbers = #tpu.dot_dimension_numbers<[1], [0], [0], [1], [0, 0, 1, 1], [], []>} : vector<64x128xbf16>, vector<128x64xbf16>, vector<64x64xf32> -> vector<64x64xf32>
    %c0_37 = arith.constant 0 : index
    %c0_38 = arith.constant 0 : index
    %76 = memref.load %arg1[%c0_37, %c0_38] : memref<1x3xf32, #tpu.memory_space<smem>>
    %cst_39 = arith.constant 0.000000e+00 : f32
    %77 = vector.broadcast %cst_39 : f32 to vector<64x64xf32>
    %78 = arith.cmpf oge, %75, %77 : vector<64x64xf32>
    %79 = vector.broadcast %76 : f32 to vector<64x64xf32>
    %80 = arith.mulf %79, %75 : vector<64x64xf32>
    %81 = arith.select %78, %75, %80 : vector<64x64xi1>, vector<64x64xf32>
    %c1_40 = arith.constant 1 : index
    %c0_41 = arith.constant 0 : index
    %c0_42 = arith.constant 0 : index
    %82 = vector.load %arg7[%c1_40, %c0_41, %c0_42] : memref<3x64x128xbf16, #tpu.memory_space<vmem>>, vector<1x64x128xbf16>
    %83 = vector.shape_cast %82 : vector<1x64x128xbf16> to vector<64x128xbf16>
    %84 = arith.truncf %81 : vector<64x64xf32> to vector<64x64xbf16>
    %cst_43 = arith.constant dense<0.000000e+00> : vector<64x128xf32>
    %85 = tpu.matmul %84, %83, %cst_43 {dimension_numbers = #tpu.dot_dimension_numbers<[1], [0], [0], [1], [0, 0, 1, 1], [], []>} : vector<64x64xbf16>, vector<64x128xbf16>, vector<64x128xf32> -> vector<64x128xf32>
    %86 = tpu.iota {dimensions = array<i32: 0>} : vector<64x64xi32>
    %c8_i32 = arith.constant 8 : i32
    %c0_i32_44 = arith.constant 0 : i32
    %87 = arith.cmpi eq, %c8_i32, %c0_i32_44 : i32
    %c1_i32_45 = arith.constant 1 : i32
    %88 = arith.select %87, %c1_i32_45, %c8_i32 : i32
    %89 = vector.broadcast %88 : i32 to vector<64x64xi32>
    %90 = arith.remsi %86, %89 : vector<64x64xi32>
    %c0_i32_46 = arith.constant 0 : i32
    %91 = vector.broadcast %c0_i32_46 : i32 to vector<64x64xi32>
    %92 = arith.cmpi ne, %90, %91 : vector<64x64xi32>
    %c0_i32_47 = arith.constant 0 : i32
    %93 = vector.broadcast %c0_i32_47 : i32 to vector<64x64xi32>
    %94 = arith.cmpi slt, %90, %93 : vector<64x64xi32>
    %c0_i32_48 = arith.constant 0 : i32
    %95 = arith.cmpi slt, %88, %c0_i32_48 : i32
    %96 = vector.broadcast %95 : i1 to vector<64x64xi1>
    %97 = vector.broadcast %96 : vector<64x64xi1> to vector<64x64xi1>
    %98 = arith.xori %94, %97 : vector<64x64xi1>
    %99 = arith.andi %98, %92 : vector<64x64xi1>
    %100 = vector.broadcast %88 : i32 to vector<64x64xi32>
    %101 = arith.addi %90, %100 : vector<64x64xi32>
    %102 = arith.select %99, %101, %90 : vector<64x64xi1>, vector<64x64xi32>
    %c1_i32_49 = arith.constant 1 : i32
    %103 = tpu.dynamic_rotate %81 by %c1_i32_49 dim 0 : vector<64x64xf32>, i32 -> vector<64x64xf32>
    %c0_i32_50 = arith.constant 0 : i32
    %104 = vector.broadcast %c0_i32_50 : i32 to vector<64x64xi32>
    %105 = arith.cmpi eq, %102, %104 : vector<64x64xi32>
    %cst_51 = arith.constant 0.000000e+00 : f32
    %106 = vector.broadcast %cst_51 : f32 to vector<64x64xf32>
    %107 = arith.select %105, %106, %103 : vector<64x64xi1>, vector<64x64xf32>
    %c0_52 = arith.constant 0 : index
    %c0_53 = arith.constant 0 : index
    %c0_54 = arith.constant 0 : index
    %108 = vector.load %arg7[%c0_52, %c0_53, %c0_54] : memref<3x64x128xbf16, #tpu.memory_space<vmem>>, vector<1x64x128xbf16>
    %109 = vector.shape_cast %108 : vector<1x64x128xbf16> to vector<64x128xbf16>
    %110 = arith.truncf %107 : vector<64x64xf32> to vector<64x64xbf16>
    %cst_55 = arith.constant dense<0.000000e+00> : vector<64x128xf32>
    %111 = tpu.matmul %110, %109, %cst_55 {dimension_numbers = #tpu.dot_dimension_numbers<[1], [0], [0], [1], [0, 0, 1, 1], [], []>} : vector<64x64xbf16>, vector<64x128xbf16>, vector<64x128xf32> -> vector<64x128xf32>
    %112 = arith.addf %85, %111 : vector<64x128xf32>
    %113 = tpu.iota {dimensions = array<i32: 0>} : vector<64x64xi32>
    %c8_i32_56 = arith.constant 8 : i32
    %c0_i32_57 = arith.constant 0 : i32
    %114 = arith.cmpi eq, %c8_i32_56, %c0_i32_57 : i32
    %c1_i32_58 = arith.constant 1 : i32
    %115 = arith.select %114, %c1_i32_58, %c8_i32_56 : i32
    %116 = vector.broadcast %115 : i32 to vector<64x64xi32>
    %117 = arith.remsi %113, %116 : vector<64x64xi32>
    %c0_i32_59 = arith.constant 0 : i32
    %118 = vector.broadcast %c0_i32_59 : i32 to vector<64x64xi32>
    %119 = arith.cmpi ne, %117, %118 : vector<64x64xi32>
    %c0_i32_60 = arith.constant 0 : i32
    %120 = vector.broadcast %c0_i32_60 : i32 to vector<64x64xi32>
    %121 = arith.cmpi slt, %117, %120 : vector<64x64xi32>
    %c0_i32_61 = arith.constant 0 : i32
    %122 = arith.cmpi slt, %115, %c0_i32_61 : i32
    %123 = vector.broadcast %122 : i1 to vector<64x64xi1>
    %124 = vector.broadcast %123 : vector<64x64xi1> to vector<64x64xi1>
    %125 = arith.xori %121, %124 : vector<64x64xi1>
    %126 = arith.andi %125, %119 : vector<64x64xi1>
    %127 = vector.broadcast %115 : i32 to vector<64x64xi32>
    %128 = arith.addi %117, %127 : vector<64x64xi32>
    %129 = arith.select %126, %128, %117 : vector<64x64xi1>, vector<64x64xi32>
    %c63_i32 = arith.constant 63 : i32
    %130 = tpu.dynamic_rotate %81 by %c63_i32 dim 0 : vector<64x64xf32>, i32 -> vector<64x64xf32>
    %c7_i32 = arith.constant 7 : i32
    %131 = vector.broadcast %c7_i32 : i32 to vector<64x64xi32>
    %132 = arith.cmpi eq, %129, %131 : vector<64x64xi32>
    %cst_62 = arith.constant 0.000000e+00 : f32
    %133 = vector.broadcast %cst_62 : f32 to vector<64x64xf32>
    %134 = arith.select %132, %133, %130 : vector<64x64xi1>, vector<64x64xf32>
    %c2_63 = arith.constant 2 : index
    %c0_64 = arith.constant 0 : index
    %c0_65 = arith.constant 0 : index
    %135 = vector.load %arg7[%c2_63, %c0_64, %c0_65] : memref<3x64x128xbf16, #tpu.memory_space<vmem>>, vector<1x64x128xbf16>
    %136 = vector.shape_cast %135 : vector<1x64x128xbf16> to vector<64x128xbf16>
    %137 = arith.truncf %134 : vector<64x64xf32> to vector<64x64xbf16>
    %cst_66 = arith.constant dense<0.000000e+00> : vector<64x128xf32>
    %138 = tpu.matmul %137, %136, %cst_66 {dimension_numbers = #tpu.dot_dimension_numbers<[1], [0], [0], [1], [0, 0, 1, 1], [], []>} : vector<64x64xbf16>, vector<64x128xbf16>, vector<64x128xf32> -> vector<64x128xf32>
    %139 = arith.addf %112, %138 : vector<64x128xf32>
    %c0_67 = arith.constant 0 : index
    %c0_68 = arith.constant 0 : index
    %140 = vector.load %arg8[%c0_67, %c0_68] : memref<1x128xf32, #tpu.memory_space<vmem>>, vector<1x128xf32>
    %141 = vector.broadcast %140 : vector<1x128xf32> to vector<64x128xf32>
    %142 = arith.addf %139, %141 : vector<64x128xf32>
    %c0_69 = arith.constant 0 : index
    %c0_70 = arith.constant 0 : index
    %c0_71 = arith.constant 0 : index
    %143 = vector.load %arg9[%c0_69, %c0_70, %c0_71] : memref<2x128x64xbf16, #tpu.memory_space<vmem>>, vector<1x128x64xbf16>
    %144 = vector.shape_cast %143 : vector<1x128x64xbf16> to vector<128x64xbf16>
    %145 = arith.truncf %142 : vector<64x128xf32> to vector<64x128xbf16>
    %cst_72 = arith.constant dense<0.000000e+00> : vector<64x64xf32>
    %146 = tpu.matmul %145, %144, %cst_72 {dimension_numbers = #tpu.dot_dimension_numbers<[1], [0], [0], [1], [0, 0, 1, 1], [], []>} : vector<64x128xbf16>, vector<128x64xbf16>, vector<64x64xf32> -> vector<64x64xf32>
    %c1_73 = arith.constant 1 : index
    %c0_74 = arith.constant 0 : index
    %c0_75 = arith.constant 0 : index
    %147 = vector.load %arg9[%c1_73, %c0_74, %c0_75] : memref<2x128x64xbf16, #tpu.memory_space<vmem>>, vector<1x128x64xbf16>
    %148 = vector.shape_cast %147 : vector<1x128x64xbf16> to vector<128x64xbf16>
    %149 = arith.truncf %142 : vector<64x128xf32> to vector<64x128xbf16>
    %cst_76 = arith.constant dense<0.000000e+00> : vector<64x64xf32>
    %150 = tpu.matmul %149, %148, %cst_76 {dimension_numbers = #tpu.dot_dimension_numbers<[1], [0], [0], [1], [0, 0, 1, 1], [], []>} : vector<64x128xbf16>, vector<128x64xbf16>, vector<64x64xf32> -> vector<64x64xf32>
    %151 = arith.maximumf %146, %150 : vector<64x64xf32>
    %c63_i32_77 = arith.constant 63 : i32
    %152 = tpu.dynamic_rotate %151 by %c63_i32_77 dim 0 : vector<64x64xf32>, i32 -> vector<64x64xf32>
    %153 = arith.maximumf %151, %152 : vector<64x64xf32>
    %c0_78 = arith.constant 0 : index
    %c0_79 = arith.constant 0 : index
    %154 = vector.load %arg10[%c0_78, %c0_79] : memref<32x64xbf16, #tpu.memory_space<vmem>>, vector<32x64xbf16>
    %155 = arith.truncf %153 : vector<64x64xf32> to vector<64x64xbf16>
    %cst_80 = arith.constant dense<0.000000e+00> : vector<32x64xf32>
    %156 = tpu.matmul %154, %155, %cst_80 {dimension_numbers = #tpu.dot_dimension_numbers<[1], [0], [0], [1], [0, 0, 1, 1], [], []>} : vector<32x64xbf16>, vector<64x64xbf16>, vector<32x64xf32> -> vector<32x64xf32>
    %c0_81 = arith.constant 0 : index
    %c1_82 = arith.constant 1 : index
    %157 = memref.load %arg1[%c0_81, %c1_82] : memref<1x3xf32, #tpu.memory_space<smem>>
    %cst_83 = arith.constant 0.000000e+00 : f32
    %158 = vector.broadcast %cst_83 : f32 to vector<32x64xf32>
    %159 = arith.cmpf oge, %156, %158 : vector<32x64xf32>
    %160 = vector.broadcast %157 : f32 to vector<32x64xf32>
    %161 = arith.mulf %160, %156 : vector<32x64xf32>
    %162 = arith.select %159, %156, %161 : vector<32x64xi1>, vector<32x64xf32>
    %c1_84 = arith.constant 1 : index
    %c0_85 = arith.constant 0 : index
    %c0_86 = arith.constant 0 : index
    %163 = vector.load %arg11[%c1_84, %c0_85, %c0_86] : memref<3x64x128xbf16, #tpu.memory_space<vmem>>, vector<1x64x128xbf16>
    %164 = vector.shape_cast %163 : vector<1x64x128xbf16> to vector<64x128xbf16>
    %165 = arith.truncf %162 : vector<32x64xf32> to vector<32x64xbf16>
    %cst_87 = arith.constant dense<0.000000e+00> : vector<32x128xf32>
    %166 = tpu.matmul %165, %164, %cst_87 {dimension_numbers = #tpu.dot_dimension_numbers<[1], [0], [0], [1], [0, 0, 1, 1], [], []>} : vector<32x64xbf16>, vector<64x128xbf16>, vector<32x128xf32> -> vector<32x128xf32>
    %167 = tpu.iota {dimensions = array<i32: 0>} : vector<32x64xi32>
    %c4_i32 = arith.constant 4 : i32
    %c0_i32_88 = arith.constant 0 : i32
    %168 = arith.cmpi eq, %c4_i32, %c0_i32_88 : i32
    %c1_i32_89 = arith.constant 1 : i32
    %169 = arith.select %168, %c1_i32_89, %c4_i32 : i32
    %170 = vector.broadcast %169 : i32 to vector<32x64xi32>
    %171 = arith.remsi %167, %170 : vector<32x64xi32>
    %c0_i32_90 = arith.constant 0 : i32
    %172 = vector.broadcast %c0_i32_90 : i32 to vector<32x64xi32>
    %173 = arith.cmpi ne, %171, %172 : vector<32x64xi32>
    %c0_i32_91 = arith.constant 0 : i32
    %174 = vector.broadcast %c0_i32_91 : i32 to vector<32x64xi32>
    %175 = arith.cmpi slt, %171, %174 : vector<32x64xi32>
    %c0_i32_92 = arith.constant 0 : i32
    %176 = arith.cmpi slt, %169, %c0_i32_92 : i32
    %177 = vector.broadcast %176 : i1 to vector<32x64xi1>
    %178 = vector.broadcast %177 : vector<32x64xi1> to vector<32x64xi1>
    %179 = arith.xori %175, %178 : vector<32x64xi1>
    %180 = arith.andi %179, %173 : vector<32x64xi1>
    %181 = vector.broadcast %169 : i32 to vector<32x64xi32>
    %182 = arith.addi %171, %181 : vector<32x64xi32>
    %183 = arith.select %180, %182, %171 : vector<32x64xi1>, vector<32x64xi32>
    %c1_i32_93 = arith.constant 1 : i32
    %184 = tpu.dynamic_rotate %162 by %c1_i32_93 dim 0 : vector<32x64xf32>, i32 -> vector<32x64xf32>
    %c0_i32_94 = arith.constant 0 : i32
    %185 = vector.broadcast %c0_i32_94 : i32 to vector<32x64xi32>
    %186 = arith.cmpi eq, %183, %185 : vector<32x64xi32>
    %cst_95 = arith.constant 0.000000e+00 : f32
    %187 = vector.broadcast %cst_95 : f32 to vector<32x64xf32>
    %188 = arith.select %186, %187, %184 : vector<32x64xi1>, vector<32x64xf32>
    %c0_96 = arith.constant 0 : index
    %c0_97 = arith.constant 0 : index
    %c0_98 = arith.constant 0 : index
    %189 = vector.load %arg11[%c0_96, %c0_97, %c0_98] : memref<3x64x128xbf16, #tpu.memory_space<vmem>>, vector<1x64x128xbf16>
    %190 = vector.shape_cast %189 : vector<1x64x128xbf16> to vector<64x128xbf16>
    %191 = arith.truncf %188 : vector<32x64xf32> to vector<32x64xbf16>
    %cst_99 = arith.constant dense<0.000000e+00> : vector<32x128xf32>
    %192 = tpu.matmul %191, %190, %cst_99 {dimension_numbers = #tpu.dot_dimension_numbers<[1], [0], [0], [1], [0, 0, 1, 1], [], []>} : vector<32x64xbf16>, vector<64x128xbf16>, vector<32x128xf32> -> vector<32x128xf32>
    %193 = arith.addf %166, %192 : vector<32x128xf32>
    %194 = tpu.iota {dimensions = array<i32: 0>} : vector<32x64xi32>
    %c4_i32_100 = arith.constant 4 : i32
    %c0_i32_101 = arith.constant 0 : i32
    %195 = arith.cmpi eq, %c4_i32_100, %c0_i32_101 : i32
    %c1_i32_102 = arith.constant 1 : i32
    %196 = arith.select %195, %c1_i32_102, %c4_i32_100 : i32
    %197 = vector.broadcast %196 : i32 to vector<32x64xi32>
    %198 = arith.remsi %194, %197 : vector<32x64xi32>
    %c0_i32_103 = arith.constant 0 : i32
    %199 = vector.broadcast %c0_i32_103 : i32 to vector<32x64xi32>
    %200 = arith.cmpi ne, %198, %199 : vector<32x64xi32>
    %c0_i32_104 = arith.constant 0 : i32
    %201 = vector.broadcast %c0_i32_104 : i32 to vector<32x64xi32>
    %202 = arith.cmpi slt, %198, %201 : vector<32x64xi32>
    %c0_i32_105 = arith.constant 0 : i32
    %203 = arith.cmpi slt, %196, %c0_i32_105 : i32
    %204 = vector.broadcast %203 : i1 to vector<32x64xi1>
    %205 = vector.broadcast %204 : vector<32x64xi1> to vector<32x64xi1>
    %206 = arith.xori %202, %205 : vector<32x64xi1>
    %207 = arith.andi %206, %200 : vector<32x64xi1>
    %208 = vector.broadcast %196 : i32 to vector<32x64xi32>
    %209 = arith.addi %198, %208 : vector<32x64xi32>
    %210 = arith.select %207, %209, %198 : vector<32x64xi1>, vector<32x64xi32>
    %c31_i32 = arith.constant 31 : i32
    %211 = tpu.dynamic_rotate %162 by %c31_i32 dim 0 : vector<32x64xf32>, i32 -> vector<32x64xf32>
    %c3_i32 = arith.constant 3 : i32
    %212 = vector.broadcast %c3_i32 : i32 to vector<32x64xi32>
    %213 = arith.cmpi eq, %210, %212 : vector<32x64xi32>
    %cst_106 = arith.constant 0.000000e+00 : f32
    %214 = vector.broadcast %cst_106 : f32 to vector<32x64xf32>
    %215 = arith.select %213, %214, %211 : vector<32x64xi1>, vector<32x64xf32>
    %c2_107 = arith.constant 2 : index
    %c0_108 = arith.constant 0 : index
    %c0_109 = arith.constant 0 : index
    %216 = vector.load %arg11[%c2_107, %c0_108, %c0_109] : memref<3x64x128xbf16, #tpu.memory_space<vmem>>, vector<1x64x128xbf16>
    %217 = vector.shape_cast %216 : vector<1x64x128xbf16> to vector<64x128xbf16>
    %218 = arith.truncf %215 : vector<32x64xf32> to vector<32x64xbf16>
    %cst_110 = arith.constant dense<0.000000e+00> : vector<32x128xf32>
    %219 = tpu.matmul %218, %217, %cst_110 {dimension_numbers = #tpu.dot_dimension_numbers<[1], [0], [0], [1], [0, 0, 1, 1], [], []>} : vector<32x64xbf16>, vector<64x128xbf16>, vector<32x128xf32> -> vector<32x128xf32>
    %220 = arith.addf %193, %219 : vector<32x128xf32>
    %c0_111 = arith.constant 0 : index
    %c0_112 = arith.constant 0 : index
    %221 = vector.load %arg12[%c0_111, %c0_112] : memref<1x128xf32, #tpu.memory_space<vmem>>, vector<1x128xf32>
    %222 = vector.broadcast %221 : vector<1x128xf32> to vector<32x128xf32>
    %223 = arith.addf %220, %222 : vector<32x128xf32>
    %c0_113 = arith.constant 0 : index
    %c2_114 = arith.constant 2 : index
    %224 = memref.load %arg1[%c0_113, %c2_114] : memref<1x3xf32, #tpu.memory_space<smem>>
    %cst_115 = arith.constant 0.000000e+00 : f32
    %225 = vector.broadcast %cst_115 : f32 to vector<32x128xf32>
    %226 = arith.cmpf oge, %223, %225 : vector<32x128xf32>
    %227 = vector.broadcast %224 : f32 to vector<32x128xf32>
    %228 = arith.mulf %227, %223 : vector<32x128xf32>
    %229 = arith.select %226, %223, %228 : vector<32x128xi1>, vector<32x128xf32>
    %c0_116 = arith.constant 0 : index
    %c0_117 = arith.constant 0 : index
    %230 = vector.load %arg13[%c0_116, %c0_117] : memref<128x64xbf16, #tpu.memory_space<vmem>>, vector<128x64xbf16>
    %231 = arith.truncf %229 : vector<32x128xf32> to vector<32x128xbf16>
    %cst_118 = arith.constant dense<0.000000e+00> : vector<32x64xf32>
    %232 = tpu.matmul %231, %230, %cst_118 {dimension_numbers = #tpu.dot_dimension_numbers<[1], [0], [0], [1], [0, 0, 1, 1], [], []>} : vector<32x128xbf16>, vector<128x64xbf16>, vector<32x64xf32> -> vector<32x64xf32>
    %c0_119 = arith.constant 0 : index
    %c0_120 = arith.constant 0 : index
    %c0_121 = arith.constant 0 : index
    %233 = vector.load %arg14[%c0_119, %c0_120, %c0_121] : memref<2x8x32xbf16, #tpu.memory_space<vmem>>, vector<1x8x32xbf16>
    %234 = vector.shape_cast %233 : vector<1x8x32xbf16> to vector<8x32xbf16>
    %235 = arith.truncf %232 : vector<32x64xf32> to vector<32x64xbf16>
    %cst_122 = arith.constant dense<0.000000e+00> : vector<8x64xf32>
    %236 = tpu.matmul %234, %235, %cst_122 {dimension_numbers = #tpu.dot_dimension_numbers<[1], [0], [0], [1], [0, 0, 1, 1], [], []>} : vector<8x32xbf16>, vector<32x64xbf16>, vector<8x64xf32> -> vector<8x64xf32>
    %c1_123 = arith.constant 1 : index
    %c0_124 = arith.constant 0 : index
    %c0_125 = arith.constant 0 : index
    %237 = vector.load %arg14[%c1_123, %c0_124, %c0_125] : memref<2x8x32xbf16, #tpu.memory_space<vmem>>, vector<1x8x32xbf16>
    %238 = vector.shape_cast %237 : vector<1x8x32xbf16> to vector<8x32xbf16>
    %239 = arith.truncf %232 : vector<32x64xf32> to vector<32x64xbf16>
    %cst_126 = arith.constant dense<0.000000e+00> : vector<8x64xf32>
    %240 = tpu.matmul %238, %239, %cst_126 {dimension_numbers = #tpu.dot_dimension_numbers<[1], [0], [0], [1], [0, 0, 1, 1], [], []>} : vector<8x32xbf16>, vector<32x64xbf16>, vector<8x64xf32> -> vector<8x64xf32>
    %c0_127 = arith.constant 0 : index
    %c0_128 = arith.constant 0 : index
    %c0_129 = arith.constant 0 : index
    %241 = vector.load %arg15[%c0_127, %c0_128, %c0_129] : memref<2x64x128xbf16, #tpu.memory_space<vmem>>, vector<1x64x128xbf16>
    %242 = vector.shape_cast %241 : vector<1x64x128xbf16> to vector<64x128xbf16>
    %243 = arith.truncf %236 : vector<8x64xf32> to vector<8x64xbf16>
    %cst_130 = arith.constant dense<0.000000e+00> : vector<8x128xf32>
    %244 = tpu.matmul %243, %242, %cst_130 {dimension_numbers = #tpu.dot_dimension_numbers<[1], [0], [0], [1], [0, 0, 1, 1], [], []>} : vector<8x64xbf16>, vector<64x128xbf16>, vector<8x128xf32> -> vector<8x128xf32>
    %c1_131 = arith.constant 1 : index
    %c0_132 = arith.constant 0 : index
    %c0_133 = arith.constant 0 : index
    %245 = vector.load %arg15[%c1_131, %c0_132, %c0_133] : memref<2x64x128xbf16, #tpu.memory_space<vmem>>, vector<1x64x128xbf16>
    %246 = vector.shape_cast %245 : vector<1x64x128xbf16> to vector<64x128xbf16>
    %247 = arith.truncf %240 : vector<8x64xf32> to vector<8x64xbf16>
    %cst_134 = arith.constant dense<0.000000e+00> : vector<8x128xf32>
    %248 = tpu.matmul %247, %246, %cst_134 {dimension_numbers = #tpu.dot_dimension_numbers<[1], [0], [0], [1], [0, 0, 1, 1], [], []>} : vector<8x64xbf16>, vector<64x128xbf16>, vector<8x128xf32> -> vector<8x128xf32>
    %249 = arith.addf %244, %248 : vector<8x128xf32>
    %c0_135 = arith.constant 0 : index
    %c0_136 = arith.constant 0 : index
    %250 = vector.load %arg16[%c0_135, %c0_136] : memref<1x128xf32, #tpu.memory_space<vmem>>, vector<1x128xf32>
    %251 = vector.broadcast %250 : vector<1x128xf32> to vector<8x128xf32>
    %252 = arith.addf %249, %251 : vector<8x128xf32>
    %c0_137 = arith.constant 0 : index
    %c0_138 = arith.constant 0 : index
    %253 = vector.load %arg17[%c0_137, %c0_138] : memref<8x128xf32, #tpu.memory_space<vmem>>, vector<8x128xf32>
    tpu.vector_store %arg17[%c0_137, %c0_138], %252 {strides = array<i32>} : memref<8x128xf32, #tpu.memory_space<vmem>>, vector<8x128xf32>,
    return
  }
  func.func @transform_0(%arg0: i32) -> (i32, i32) {
    %c0_i32 = arith.constant 0 : i32
    %c0_i32_0 = arith.constant 0 : i32
    %c0_i32_1 = arith.constant 0 : i32
    return %c0_i32, %c0_i32_0 : i32, i32
  }
  func.func @transform_1(%arg0: i32) -> (i32, i32) {
    %c0_i32 = arith.constant 0 : i32
    %c0_i32_0 = arith.constant 0 : i32
    return %arg0, %c0_i32 : i32, i32
  }
  func.func @transform_2(%arg0: i32) -> (i32, i32, i32) {
    %c0_i32 = arith.constant 0 : i32
    %c0_i32_0 = arith.constant 0 : i32
    %c0_i32_1 = arith.constant 0 : i32
    %c0_i32_2 = arith.constant 0 : i32
    return %c0_i32, %c0_i32_0, %c0_i32_1 : i32, i32, i32
  }
  func.func @transform_3(%arg0: i32) -> (i32, i32) {
    %c0_i32 = arith.constant 0 : i32
    %c0_i32_0 = arith.constant 0 : i32
    %c0_i32_1 = arith.constant 0 : i32
    return %c0_i32, %c0_i32_0 : i32, i32
  }
  func.func @transform_4(%arg0: i32) -> (i32, i32, i32) {
    %c0_i32 = arith.constant 0 : i32
    %c0_i32_0 = arith.constant 0 : i32
    %c0_i32_1 = arith.constant 0 : i32
    %c0_i32_2 = arith.constant 0 : i32
    return %c0_i32, %c0_i32_0, %c0_i32_1 : i32, i32, i32
  }
  func.func @transform_5(%arg0: i32) -> (i32, i32) {
    %c0_i32 = arith.constant 0 : i32
    %c0_i32_0 = arith.constant 0 : i32
    %c0_i32_1 = arith.constant 0 : i32
    return %c0_i32, %c0_i32_0 : i32, i32
  }
  func.func @transform_6(%arg0: i32) -> (i32, i32, i32) {
    %c0_i32 = arith.constant 0 : i32
    %c0_i32_0 = arith.constant 0 : i32
    %c0_i32_1 = arith.constant 0 : i32
    %c0_i32_2 = arith.constant 0 : i32
    return %c0_i32, %c0_i32_0, %c0_i32_1 : i32, i32, i32
  }
  func.func @transform_7(%arg0: i32) -> (i32, i32) {
    %c0_i32 = arith.constant 0 : i32
    %c0_i32_0 = arith.constant 0 : i32
    %c0_i32_1 = arith.constant 0 : i32
    return %c0_i32, %c0_i32_0 : i32, i32
  }
  func.func @transform_8(%arg0: i32) -> (i32, i32, i32) {
    %c0_i32 = arith.constant 0 : i32
    %c0_i32_0 = arith.constant 0 : i32
    %c0_i32_1 = arith.constant 0 : i32
    %c0_i32_2 = arith.constant 0 : i32
    return %c0_i32, %c0_i32_0, %c0_i32_1 : i32, i32, i32
  }
  func.func @transform_9(%arg0: i32) -> (i32, i32) {
    %c0_i32 = arith.constant 0 : i32
    %c0_i32_0 = arith.constant 0 : i32
    %c0_i32_1 = arith.constant 0 : i32
    return %c0_i32, %c0_i32_0 : i32, i32
  }
  func.func @transform_10(%arg0: i32) -> (i32, i32, i32) {
    %c0_i32 = arith.constant 0 : i32
    %c0_i32_0 = arith.constant 0 : i32
    %c0_i32_1 = arith.constant 0 : i32
    %c0_i32_2 = arith.constant 0 : i32
    return %c0_i32, %c0_i32_0, %c0_i32_1 : i32, i32, i32
  }
  func.func @transform_11(%arg0: i32) -> (i32, i32) {
    %c0_i32 = arith.constant 0 : i32
    %c0_i32_0 = arith.constant 0 : i32
    %c0_i32_1 = arith.constant 0 : i32
    return %c0_i32, %c0_i32_0 : i32, i32
  }
  func.func @transform_12(%arg0: i32) -> (i32, i32) {
    %c0_i32 = arith.constant 0 : i32
    %c0_i32_0 = arith.constant 0 : i32
    %c0_i32_1 = arith.constant 0 : i32
    return %c0_i32, %c0_i32_0 : i32, i32
  }
  func.func @transform_13(%arg0: i32) -> (i32, i32, i32) {
    %c0_i32 = arith.constant 0 : i32
    %c0_i32_0 = arith.constant 0 : i32
    %c0_i32_1 = arith.constant 0 : i32
    %c0_i32_2 = arith.constant 0 : i32
    return %c0_i32, %c0_i32_0, %c0_i32_1 : i32, i32, i32
  }
  func.func @transform_14(%arg0: i32) -> (i32, i32, i32) {
    %c0_i32 = arith.constant 0 : i32
    %c0_i32_0 = arith.constant 0 : i32
    %c0_i32_1 = arith.constant 0 : i32
    %c0_i32_2 = arith.constant 0 : i32
    return %c0_i32, %c0_i32_0, %c0_i32_1 : i32, i32, i32
  }
  func.func @transform_15(%arg0: i32) -> (i32, i32) {
    %c0_i32 = arith.constant 0 : i32
    %c0_i32_0 = arith.constant 0 : i32
    %c0_i32_1 = arith.constant 0 : i32
    return %c0_i32, %c0_i32_0 : i32, i32
  }
  func.func @transform_16(%arg0: i32) -> (i32, i32) {
    %c0_i32 = arith.constant 0 : i32
    %c0_i32_0 = arith.constant 0 : i32
    return %arg0, %c0_i32 : i32, i32
  }
}

</mosaic_0001>

<bundles_post_ra>
// kernel: tile.19
= control target key start
LH: loop header
LB: loop body
LE: loop exit
PB: predicated region body
PF: predicated region fallthrough
CT: control target
= control target key end

     0   :  { %s131_s10 = smov 120   ;;  %s132_s11 = smov 104   ;;  %vm3_vm0 = vcmask 64512   ;;  %vm9_vm1 = vcmask 1048512   ;;  %vm15_vm2 = vcmask 982912   ;;  %vm21_vm3 = vcmask 917312   ;;  %s207_s0 = inlined_call_operand.vmem [shape: f32[16,8], index: 0, kind: input, shape index: {}]   ;;  %s208_s1 = inlined_call_operand.vmem [shape: f32[1,128], index: 1, kind: output, shape index: {}]  }
   0x1   :  { %v101_v0 = vld [vmem:[%s207_s0 + $0xf] sm:$0x1]   ;;  %v103_v1 = vld [vmem:[%s207_s0 + $0xd] sm:$0x1]   ;;  %v105_v2 = vld [vmem:[%s207_s0 + $0xb] sm:$0x1]  }
   0x2   :  { %7 = vrot.lane.b32.xlu0 %v101_v0, %s131_s10  ;;  %19 = vrot.lane.b32.xlu1 %v103_v1, %s132_s11  ;;  %s133_s14 = smov 88   ;;  %v102_v3 = vld [vmem:[%s207_s0 + $0xe] sm:$0x1]   ;;  %v104_v4 = vld [vmem:[%s207_s0 + $0xc] sm:$0x1]   ;;  %s134_s19 = smov 112  }
   0x3   :  { %31 = vrot.lane.b32.xlu2 %v105_v2, %s133_s14  ;;  %s135_s20 = smov 96   ;;  %v106_v5 = vld [vmem:[%s207_s0 + $0xa] sm:$0x1]   ;;  %s136_s23 = smov 80   ;;  %v107_v6 = vld [vmem:[%s207_s0 + $0x9] sm:$0x1]  }
   0x4   :  { %v108_v7 = vld [vmem:[%s207_s0 + $0x8] sm:$0x1]   ;;  %s137_s28 = smov 72   ;;  %s138_s29 = smov 64   ;;  %v109_v8 = vld [vmem:[%s207_s0 + $0x7] sm:$0x1]  }
   0x5   :  { %s139_s3 = smov 56   ;;  %v110_v9 = vld [vmem:[%s207_s0 + $0x6] sm:$0x1]   ;;  %v111_v10 = vld [vmem:[%s207_s0 + $0x5] sm:$0x1]   ;;  %s140_s8 = smov 48  }
   0x6   :  { %s141_s9 = smov 40   ;;  %v112_v11 = vld [vmem:[%s207_s0 + $0x4] sm:$0x1]   ;;  %s142_s12 = smov 32   ;;  %v113_v12 = vld [vmem:[%s207_s0 + $0x3] sm:$0x1]  }
   0x7   :  { %v114_v13 = vld [vmem:[%s207_s0 + $0x2] sm:$0x1]   ;;  %s143_s17 = smov 24   ;;  %s144_s18 = smov 16   ;;  %v115_v14 = vld [vmem:[%s207_s0 + $0x1] sm:$0x1]  }
   0x8   :  { %s145_s21 = smov 8   ;;  %v2_v15 = vld [vmem:[%s207_s0] sm:$0x1]   ;;  %vm27_vm4 = vcmask 851712   ;;  %vm33_vm5 = vcmask 786112   ;;  %vm39_vm6 = vcmask 720512  }
   0x9   :  { %4 = vst.msk [vmem:[#allocation0] sm:$0x1] %vm3_vm0, %v2_v15   ;;  %vm45_vm7 = vcmask 654912   ;;  %vm51_vm8 = vcmask 589312   ;;  %vm57_vm9 = vcmask 523712   ;;  %vm63_vm10 = vcmask 458112  }
   0xa   :  { %13 = vrot.lane.b32.xlu0 %v102_v3, %s134_s19  ;;  %25 = vrot.lane.b32.xlu1 %v104_v4, %s135_s20  ;;  %vm69_vm11 = vcmask 392512   ;;  %vm75_vm12 = vcmask 326912   ;;  %vm81_vm13 = vcmask 261312   ;;  %vm87_vm14 = vcmask 195712  }
   0xb   :  { %37 = vrot.lane.b32.xlu2 %v106_v5, %s136_s23  ;;  %vm93_vm15 = vcmask 130112  }
  0x12   :  { %43 = vrot.lane.b32.xlu0 %v107_v6, %s137_s28  ;;  %49 = vrot.lane.b32.xlu1 %v108_v7, %s138_s29 }
  0x13   :  { %55 = vrot.lane.b32.xlu2 %v109_v8, %s139_s3 }
  0x1a   :  { %61 = vrot.lane.b32.xlu0 %v110_v9, %s140_s8  ;;  %67 = vrot.lane.b32.xlu1 %v111_v10, %s141_s9 }
  0x1b   :  { %73 = vrot.lane.b32.xlu2 %v112_v11, %s142_s12 }
  0x22   :  { %79 = vrot.lane.b32.xlu0 %v113_v12, %s143_s17  ;;  %85 = vrot.lane.b32.xlu1 %v114_v13, %s144_s18 }
  0x23   :  { %91 = vrot.lane.b32.xlu2 %v115_v14, %s145_s21 }
  0x5d   :  { %v32_v16 = vpop.permute.xlu2 %31  }
  0x65   :  { %v38_v17 = vpop.permute.xlu2 %37  }
  0x6d   :  { %v56_v18 = vpop.permute.xlu2 %55  }
  0x74   :  { %v8_v19 = vpop.permute.xlu0 %7   ;;  %v20_v20 = vpop.permute.xlu1 %19  }
  0x75   :  { %10 = vst.msk [vmem:[#allocation0] sm:$0x1] %vm9_vm1, %v8_v19   ;;  %v74_v21 = vpop.permute.xlu2 %73  }
  0x7c   :  { %v14_v22 = vpop.permute.xlu0 %13   ;;  %v26_v23 = vpop.permute.xlu1 %25  }
  0x7d   :  { %16 = vst.msk [vmem:[#allocation0] sm:$0x1] %vm15_vm2, %v14_v22   ;;  %v92_v24 = vpop.permute.xlu2 %91  }
  0x7e   :  { %22 = vst.msk [vmem:[#allocation0] sm:$0x1] %vm21_vm3, %v20_v20  }
  0x7f   :  { %28 = vst.msk [vmem:[#allocation0] sm:$0x1] %vm27_vm4, %v26_v23  }
  0x80   :  { %34 = vst.msk [vmem:[#allocation0] sm:$0x1] %vm33_vm5, %v32_v16  }
  0x81   :  { %40 = vst.msk [vmem:[#allocation0] sm:$0x1] %vm39_vm6, %v38_v17  }
  0x84   :  { %v44_v25 = vpop.permute.xlu0 %43   ;;  %v50_v26 = vpop.permute.xlu1 %49  }
  0x85   :  { %46 = vst.msk [vmem:[#allocation0] sm:$0x1] %vm45_vm7, %v44_v25  }
  0x86   :  { %52 = vst.msk [vmem:[#allocation0] sm:$0x1] %vm51_vm8, %v50_v26  }
  0x87   :  { %58 = vst.msk [vmem:[#allocation0] sm:$0x1] %vm57_vm9, %v56_v18  }
  0x8c   :  { %v62_v27 = vpop.permute.xlu0 %61   ;;  %v68_v28 = vpop.permute.xlu1 %67  }
  0x8d   :  { %64 = vst.msk [vmem:[#allocation0] sm:$0x1] %vm63_vm10, %v62_v27  }
  0x8e   :  { %70 = vst.msk [vmem:[#allocation0] sm:$0x1] %vm69_vm11, %v68_v28  }
  0x8f   :  { %76 = vst.msk [vmem:[#allocation0] sm:$0x1] %vm75_vm12, %v74_v21  }
  0x94   :  { %v80_v29 = vpop.permute.xlu0 %79   ;;  %v86_v30 = vpop.permute.xlu1 %85  }
  0x95   :  { %82 = vst.msk [vmem:[#allocation0] sm:$0x1] %vm81_vm13, %v80_v29  }
  0x96   :  { %88 = vst.msk [vmem:[#allocation0] sm:$0x1] %vm87_vm14, %v86_v30  }
  0x97   :  { %94 = vst.msk [vmem:[#allocation0] sm:$0x1] %vm93_vm15, %v92_v24  }
  0x9e   :  { %v97_v31 = vld [vmem:[#allocation0] sm:$0x1] }
  0x9f   :  { %100 = vst [vmem:[%s208_s1] sm:$0x1] %v97_v31 }

// kernel: tile.23
= control target key start
LH: loop header
LB: loop body
LE: loop exit
PB: predicated region body
PF: predicated region fallthrough
CT: control target
= control target key end

     0   :  { %s22_s0 = inlined_call_operand.vmem [shape: f32[16], index: 0, kind: input, shape index: {}]   ;;  %s23_s1 = inlined_call_operand.vmem [shape: f32[8,16], index: 1, kind: output, shape index: {}]  }
   0x1   :  { %v4_v0 = vld [vmem:[%s22_s0] ss:$0 sm:$0xff] }
   0x2   :  { %5 = vst [vmem:[%s23_s1] sm:$0xff] %v4_v0 }

// kernel: tile.24
= control target key start
LH: loop header
LB: loop body
LE: loop exit
PB: predicated region body
PF: predicated region fallthrough
CT: control target
= control target key end

     0   :  { %s67_s10 = smov 112   ;;  %s68_s11 = smov 80   ;;  %vm3_vm0 = vcmask 130048   ;;  %vm9_vm1 = vcmask 1048448   ;;  %vm15_vm2 = vcmask 917248   ;;  %vm21_vm3 = vcmask 786048   ;;  %s111_s0 = inlined_call_operand.vmem [shape: f32[8,16], index: 0, kind: input, shape index: {}]   ;;  %s112_s1 = inlined_call_operand.vmem [shape: f32[1,128], index: 1, kind: output, shape index: {}]  }
   0x1   :  { %v53_v0 = vld [vmem:[%s111_s0 + $0x7] sm:$0x1]   ;;  %v55_v1 = vld [vmem:[%s111_s0 + $0x5] sm:$0x1]   ;;  %v57_v2 = vld [vmem:[%s111_s0 + $0x3] sm:$0x1]  }
   0x2   :  { %7 = vrot.lane.b32.xlu0 %v53_v0, %s67_s10  ;;  %19 = vrot.lane.b32.xlu1 %v55_v1, %s68_s11  ;;  %s69_s14 = smov 48   ;;  %v54_v3 = vld [vmem:[%s111_s0 + $0x6] sm:$0x1]   ;;  %v56_v4 = vld [vmem:[%s111_s0 + $0x4] sm:$0x1]   ;;  %s70_s21 = smov 96  }
   0x3   :  { %31 = vrot.lane.b32.xlu2 %v57_v2, %s69_s14  ;;  %v58_v5 = vld [vmem:[%s111_s0 + $0x2] sm:$0x1]   ;;  %s71_s22 = smov 64   ;;  %s72_s23 = smov 32   ;;  %v59_v6 = vld [vmem:[%s111_s0 + $0x1] sm:$0x1]  }
   0x4   :  { %s73_s26 = smov 16   ;;  %v2_v7 = vld [vmem:[%s111_s0] sm:$0x1]   ;;  %vm27_vm4 = vcmask 654848   ;;  %vm33_vm5 = vcmask 523648   ;;  %vm39_vm6 = vcmask 392448  }
   0x5   :  { %4 = vst.msk [vmem:[#allocation0] sm:$0x1] %vm3_vm0, %v2_v7   ;;  %vm45_vm7 = vcmask 261248  }
   0xa   :  { %13 = vrot.lane.b32.xlu0 %v54_v3, %s70_s21  ;;  %25 = vrot.lane.b32.xlu1 %v56_v4, %s71_s22 }
   0xb   :  { %37 = vrot.lane.b32.xlu2 %v58_v5, %s72_s23 }
  0x12   :  { %43 = vrot.lane.b32.xlu0 %v59_v6, %s73_s26 }
  0x5d   :  { %v32_v8 = vpop.permute.xlu2 %31  }
  0x65   :  { %v38_v9 = vpop.permute.xlu2 %37  }
  0x74   :  { %v8_v10 = vpop.permute.xlu0 %7   ;;  %v20_v11 = vpop.permute.xlu1 %19  }
  0x75   :  { %10 = vst.msk [vmem:[#allocation0] sm:$0x1] %vm9_vm1, %v8_v10  }
  0x7c   :  { %v14_v12 = vpop.permute.xlu0 %13   ;;  %v26_v13 = vpop.permute.xlu1 %25  }
  0x7d   :  { %16 = vst.msk [vmem:[#allocation0] sm:$0x1] %vm15_vm2, %v14_v12  }
  0x7e   :  { %22 = vst.msk [vmem:[#allocation0] sm:$0x1] %vm21_vm3, %v20_v11  }
  0x7f   :  { %28 = vst.msk [vmem:[#allocation0] sm:$0x1] %vm27_vm4, %v26_v13  }
  0x80   :  { %34 = vst.msk [vmem:[#allocation0] sm:$0x1] %vm33_vm5, %v32_v8  }
  0x81   :  { %40 = vst.msk [vmem:[#allocation0] sm:$0x1] %vm39_vm6, %v38_v9  }
  0x84   :  { %v44_v14 = vpop.permute.xlu0 %43  }
  0x85   :  { %46 = vst.msk [vmem:[#allocation0] sm:$0x1] %vm45_vm7, %v44_v14  }
  0x8c   :  { %v49_v15 = vld [vmem:[#allocation0] sm:$0x1] }
  0x8d   :  { %52 = vst [vmem:[%s112_s1] sm:$0x1] %v49_v15 }

// kernel: tile.28
= control target key start
LH: loop header
LB: loop body
LE: loop exit
PB: predicated region body
PF: predicated region fallthrough
CT: control target
= control target key end

     0   :  { %s22_s0 = inlined_call_operand.vmem [shape: f32[32], index: 0, kind: input, shape index: {}]   ;;  %s23_s1 = inlined_call_operand.vmem [shape: f32[4,32], index: 1, kind: output, shape index: {}]  }
   0x1   :  { %v4_v0 = vld [vmem:[%s22_s0] ss:$0 sm:$0xff] }
   0x2   :  { %5 = vst [vmem:[%s23_s1] sm:$0xf] %v4_v0 }

// kernel: tile.29
= control target key start
LH: loop header
LB: loop body
LE: loop exit
PB: predicated region body
PF: predicated region fallthrough
CT: control target
= control target key end

     0   :  { %s37_s8 = smov 32   ;;  %s38_s9 = smov 64   ;;  %vm7_vm0 = vcmask 261120   ;;  %vm13_vm1 = vcmask 1048320   ;;  %vm19_vm2 = vcmask 785920   ;;  %vm25_vm3 = vcmask 523520   ;;  %s55_s0 = inlined_call_operand.vmem [shape: f32[4,32], index: 0, kind: input, shape index: {}]   ;;  %s56_s1 = inlined_call_operand.vmem [shape: f32[1,128], index: 1, kind: output, shape index: {}]  }
   0x1   :  { %v4_v0 = vld [vmem:[%s55_s0] sm:$0xf]  ;;  %s36_s0 = smov 96  }
   0x2   :  { %5 = vst [vmem:[#allocation1] sm:$0xf] %v4_v0 }
   0x9   :  { %v10_v1 = vld [vmem:[#allocation1 + $0x3] sm:$0x1]   ;;  %v22_v2 = vld [vmem:[#allocation1 + $0x1] sm:$0x1]   ;;  %v16_v3 = vld [vmem:[#allocation1 + $0x2] sm:$0x1]  }
   0xa   :  { %11 = vrot.lane.b32.xlu0 %v10_v1, %s36_s0  ;;  %23 = vrot.lane.b32.xlu1 %v22_v2, %s37_s8  ;;  %v6_v4 = vld [vmem:[#allocation1] sm:$0x1]  }
   0xb   :  { %8 = vst.msk [vmem:[#allocation0] sm:$0x1] %vm7_vm0, %v6_v4  }
  0x12   :  { %17 = vrot.lane.b32.xlu0 %v16_v3, %s38_s9 }
  0x7c   :  { %v12_v5 = vpop.permute.xlu0 %11   ;;  %v24_v6 = vpop.permute.xlu1 %23  }
  0x7d   :  { %14 = vst.msk [vmem:[#allocation0] sm:$0x1] %vm13_vm1, %v12_v5  }
  0x84   :  { %v18_v7 = vpop.permute.xlu0 %17  }
  0x85   :  { %20 = vst.msk [vmem:[#allocation0] sm:$0x1] %vm19_vm2, %v18_v7  }
  0x86   :  { %26 = vst.msk [vmem:[#allocation0] sm:$0x1] %vm25_vm3, %v24_v6  }
  0x8d   :  { %v29_v8 = vld [vmem:[#allocation0] sm:$0x1] }
  0x8e   :  { %32 = vst [vmem:[%s56_s1] sm:$0x1] %v29_v8 }

// kernel: conv_forward.1
= control target key start
LH: loop header
LB: loop body
LE: loop exit
PB: predicated region body
PF: predicated region fallthrough
CT: control target
= control target key end

     0   :  { %s4256_s0 = inlined_call_operand.vmem [shape: f32[1,3], index: 0, kind: input, shape index: {}]   ;;  %s4257_s1 = inlined_call_operand.vmem [shape: f32[512,16], index: 1, kind: input, shape index: {}]   ;;  %s4258_s2 = inlined_call_operand.vmem [shape: bf16[3,16,128], index: 2, kind: input, shape index: {}]   ;;  %s4259_s3 = inlined_call_operand.vmem [shape: f32[1,128], index: 3, kind: input, shape index: {}]   ;;  %s4260_s4 = inlined_call_operand.vmem [shape: bf16[2,128,64], index: 4, kind: input, shape index: {}]   ;;  %s4261_s5 = inlined_call_operand.vmem [shape: bf16[64,128], index: 5, kind: input, shape index: {}]   ;;  %s4262_s6 = inlined_call_operand.vmem [shape: bf16[3,64,128], index: 6, kind: input, shape index: {}]   ;;  %s4263_s7 = inlined_call_operand.vmem [shape: f32[1,128], index: 7, kind: input, shape index: {}]   ;;  %s4264_s8 = inlined_call_operand.vmem [shape: bf16[2,128,64], index: 8, kind: input, shape index: {}]   ;;  %s4265_s9 = inlined_call_operand.vmem [shape: bf16[32,64], index: 9, kind: input, shape index: {}]   ;;  %s4266_s10 = inlined_call_operand.vmem [shape: bf16[3,64,128], index: 10, kind: input, shape index: {}]   ;;  %s4267_s11 = inlined_call_operand.vmem [shape: f32[1,128], index: 11, kind: input, shape index: {}]   ;;  %s4268_s12 = inlined_call_operand.vmem [shape: bf16[128,64], index: 12, kind: input, shape index: {}]   ;;  %s4269_s13 = inlined_call_operand.vmem [shape: bf16[2,8,32], index: 13, kind: input, shape index: {}]   ;;  %s4270_s14 = inlined_call_operand.vmem [shape: bf16[2,64,128], index: 14, kind: input, shape index: {}]   ;;  %s4271_s15 = inlined_call_operand.vmem [shape: f32[1,128], index: 15, kind: input, shape index: {}]   ;;  %s4272_s16 = inlined_call_operand.vmem [shape: f32[32,128], index: 16, kind: output, shape index: {}]  }
   0x1   :  { %4273 = sst [smem:[#allocation5_spill]] %s4256_s0 }
   0x2   :  { %21 = vsyncpa [#allocation3], 0  ;;  %s3544_s21 = smov 0  }
   0x3 LB: > { %s3550_s22 = sadd.s32 4294967295, %s3456_s21   ;;  %p2866_p0 = scmp.ge.s32.totalorder %s3456_s21, 1  ;;  %s3456_s21 = sphi %s3544_s21, %s27_s21  }
   0x4   : > { %p399_p1 = scmp.lt.s32.totalorder %s3456_s21, 5  ;;  %s4274_s25 = sld [smem:[#allocation5_spill]] }
   0x5   : > { %p3416_p3 = scmp.eq.s32.totalorder %s3550_s22, 0  ;;  %s3458_s27 = smov [#allocation2]  }
   0x6   : > { %p400_p2 = pnand %p2866_p0, %p399_p1 }
   0x8   : > { %p3412_p4 = pneg %p400_p2  ;;  %475 = sbr.rel (%p400_p2) target bundleno = 1750 (0x6d6), region = 84 }
   0xa   : > { %s411_s26 = sshll.u32 %s4274_s25, 4  ;;  %p3413_p5 = pnand %p3416_p3, %p3412_p4  ;;  %s412_s26 = int_to_ptr.vmem [resolvable:$true] %s411_s26 }
   0xc   : > { %3415 = dma.vmem_to_smem (!%p3413_p5), %s412_s26, 16, %s3458_s27, [#allocation3]  }
   0xd   : > { %3451 = dma.done.wait (%p3416_p3), [#allocation3], 16  }
   0xe   : > { %3453 = vsyncadd (%p3416_p3), [#allocation3], 4294967280 }
   0xf   : > { %482 = sfence }
  0x10   : > { %v3327_v0 = vld [vmem:[%s4258_s2 + $0x8] sm:$0xff]  ;;  %s2871_s30 = sshll.u32 %s3550_s22, 4  ;;  %v3328_v1 = vld [vmem:[%s4258_s2] sm:$0xff]  ;;  %v3329_v2 = vld [vmem:[%s4258_s2 + $0x10] sm:$0xff]  ;;  %v564_v3 = vlaneseq  ;;  %vm854_vm0 = vcmask 130048   ;;  %s1566_s17 = sld [smem:[#allocation2]] }
  0x11   : > { %p527_p6 = scmp.lt.s32.totalorder %s2871_s30, 63  ;;  %965 = vmatpush.bf16.msra.mxu1 %v3327_v0  ;;  %886 = vmatpush.bf16.msra.mxu0 %v3328_v1  ;;  %s3176_s23 = sld [smem:[#allocation2 + $0x1]] }
  0x12   : > { %v3568_v4 = vshrl.u32 %v564_v3, 7  ;;  %1120 = vmatpush.bf16.msra.mxu2 %v3329_v2  ;;  %s3247_s29 = sld [smem:[#allocation2 + $0x2]]  ;;  %p532_p7 = scmp.lt.s32.totalorder %s3550_s22, 3 }
  0x13   : > { %s4288_s30 = smov (!%p527_p6, %s2871_s30), 63 }
  0x14   : > { %v585_v5 = vand.u32 15, %v3568_v4  ;;  %v3572_v6 = vadd.s32 8, %v3568_v4  ;;  %s2872_s20 = sshll.u32 %s4288_s30, 3  ;;  %vm789_vm1 = vcmp.lt.s32.totalorder %v3568_v4, 1  ;;  %vm1023_vm3 = vcmp.lt.s32.totalorder %v3568_v4, 7  ;;  %s4290_s22 = smov (!%p532_p7, %s3550_s22), 3 }
  0x15   : > { %s3577_s25 = scalar_lea.vmem %s4257_s1, %s2872_s20  ;;  %v3614_v26 = vadd.s32 16, %v3568_v4  ;;  %v3617_v29 = vadd.s32 24, %v3568_v4  ;;  %v3636_v48 = vadd.s32 32, %v3568_v4  ;;  %v3639_v49 = vadd.s32 40, %v3568_v4  ;;  %s2873_s26 = sshll.u32 %s4290_s22, 3 }
  0x16   : > { %v592_v7 = vand.u32 15, %v3572_v6  ;;  %v3581_v8 = vld [vmem:[%s3577_s25] sm:$0xff]  ;;  %v538_v9 = vld [vmem:[%s3577_s25 + $0x8] sm:$0xff]  ;;  %v3585_v10 = vld [vmem:[%s3577_s25 + $0x78] sm:$0xff]  ;;  %vm3588_vm2 = vcmp.eq.s32.totalorder %v585_v5, 0  ;;  %v3657_v3 = vadd.s32 48, %v3568_v4  ;;  %s535_s0 = scalar_lea.vmem %s4272_s16, %s2873_s26 }
  0x17   : > { %v556_v12 = vpack.c.bf16 %v538_v9, %v3581_v8  ;;  %v773_v13 = vrot.slane %v3581_v8, 7  ;;  %v774_v14 = vrot.slane %v538_v9, 7  ;;  %v1007_v15 = vrot.slane %v3581_v8, 1  ;;  %v539_v16 = vld [vmem:[%s3577_s25 + $0x10] sm:$0xff]  ;;  %v540_v30 = vld [vmem:[%s3577_s25 + $0x18] sm:$0xff]  ;;  %v541_v31 = vld [vmem:[%s3577_s25 + $0x20] sm:$0xff] }
  0x18   : > { %v1008_v17 = vrot.slane %v538_v9, 1  ;;  %v788_v18 = vrot.slane %v3585_v10, 7  ;;  %v1009_v19 = vrot.slane %v539_v16, 1  ;;  %vm1041_vm4 = vcmp.eq.s32.totalorder %v592_v7, 15  ;;  %v542_v47 = vld [vmem:[%s3577_s25 + $0x28] sm:$0xff]  ;;  %v543_v50 = vld [vmem:[%s3577_s25 + $0x30] sm:$0xff] }
  0x19   : > { %2892 = vmatmul.msk.bf16.vlgmr.msra.gmra.mxu1 %vm854_vm0, %v556_v12  ;;  %v804_v20 = vsel %vm789_vm1, %v773_v13, %v774_v14  ;;  %v599_v32 = vand.u32 15, %v3614_v26  ;;  %v1010_v33 = vrot.slane %v540_v30, 1  ;;  %v775_v34 = vrot.slane %v539_v16, 7  ;;  %v544_v2 = vld [vmem:[%s3577_s25 + $0x38] sm:$0xff]  ;;  %v545_v7 = vld [vmem:[%s3577_s25 + $0x40] sm:$0xff]  ;;  %v3331_v8 = vld [vmem:[%s4260_s4 + $0x8] sm:$0xff] }
  0x1a   : > { %v805_v21 = vsel %vm789_vm1, %v788_v18, %v773_v13  ;;  %v1037_v22 = vsel %vm1023_vm3, %v1008_v17, %v1009_v19  ;;  %v1038_v23 = vsel %vm1023_vm3, %v1007_v15, %v1008_v17  ;;  %v606_v35 = vand.u32 15, %v3617_v29 }
  0x1b   : > { %v822_v24 = vsel %vm3588_vm2, 0.0, %v805_v21  ;;  %v1057_v25 = vsel %vm1041_vm4, 0.0, %v1037_v22  ;;  %v1011_v36 = vrot.slane %v541_v31, 1  ;;  %v776_v37 = vrot.slane %v540_v30, 7 }
  0x1c   : > { %v840_v27 = vpack.c.bf16 %v804_v20, %v822_v24  ;;  %v1075_v28 = vpack.c.bf16 %v1057_v25, %v1038_v23  ;;  %v803_v38 = vsel %vm789_vm1, %v774_v14, %v775_v34  ;;  %vm808_vm5 = vcmp.eq.s32.totalorder %v599_v32, 0  ;;  %v547_v32 = vld [vmem:[%s3577_s25 + $0x50] sm:$0xff] }
  0x1d   : > { %v1035_v39 = vsel %vm1023_vm3, %v1010_v33, %v1011_v36  ;;  %vm1043_vm6 = vcmp.eq.s32.totalorder %v606_v35, 15  ;;  %v557_v40 = vpack.c.bf16 %v540_v30, %v539_v16  ;;  %v802_v41 = vsel %vm789_vm1, %v775_v34, %v776_v37 }
  0x1e   : > { %2880 = vmatmul.msk.bf16.vlgmr.msra.gmra.mxu0 %vm854_vm0, %v840_v27  ;;  %2906 = vmatmul.msk.bf16.vlgmr.msra.gmra.mxu2 %vm854_vm0, %v1075_v28  ;;  %v824_v42 = vsel %vm808_vm5, 0.0, %v803_v38  ;;  %v1036_v43 = vsel %vm1023_vm3, %v1009_v19, %v1010_v33  ;;  %v1059_v44 = vsel %vm1043_vm6, 0.0, %v1035_v39  ;;  %v1012_v51 = vrot.slane %v542_v47, 1  ;;  %v546_v28 = vld [vmem:[%s3577_s25 + $0x48] sm:$0xff] }
  0x1f   : > { %v841_v45 = vpack.c.bf16 %v802_v41, %v824_v42  ;;  %v1076_v46 = vpack.c.bf16 %v1059_v44, %v1036_v43  ;;  %v613_v52 = vand.u32 15, %v3636_v48  ;;  %v777_v53 = vrot.slane %v541_v31, 7 }
  0x20   : > { %v620_v54 = vand.u32 15, %v3639_v49  ;;  %v1013_v55 = vrot.slane %v543_v50, 1  ;;  %v778_v56 = vrot.slane %v542_v47, 7  ;;  %v558_v59 = vpack.c.bf16 %v542_v47, %v541_v31 }
  0x21   : > { %v801_v57 = vsel %vm789_vm1, %v776_v37, %v777_v53  ;;  %vm810_vm7 = vcmp.eq.s32.totalorder %v613_v52, 0  ;;  %v1034_v62 = vsel %vm1023_vm3, %v1011_v36, %v1012_v51  ;;  %v3660_v5 = vadd.s32 56, %v3568_v4 }
  0x22   : > { %v1033_v58 = vsel %vm1023_vm3, %v1012_v51, %v1013_v55  ;;  %vm1045_vm8 = vcmp.eq.s32.totalorder %v620_v54, 15  ;;  %v800_v60 = vsel %vm789_vm1, %v777_v53, %v778_v56  ;;  %v826_v61 = vsel %vm810_vm7, 0.0, %v801_v57  ;;  %v549_v53 = vld [vmem:[%s3577_s25 + $0x60] sm:$0xff] }
  0x23   : > { %v1061_v63 = vsel %vm1045_vm8, 0.0, %v1033_v58  ;;  %v842_v0 = vpack.c.bf16 %v800_v60, %v826_v61  ;;  %v1014_v9 = vrot.slane %v544_v2, 1  ;;  %v627_v11 = vand.u32 15, %v3657_v3 }
  0x24   : > { %v1077_v1 = vpack.c.bf16 %v1061_v63, %v1034_v62  ;;  %v779_v12 = vrot.slane %v543_v50, 7  ;;  %v634_v13 = vand.u32 15, %v3660_v5  ;;  %v1015_v14 = vrot.slane %v545_v7, 1 }
  0x25   : > { %v780_v16 = vrot.slane %v544_v2, 7  ;;  %vm812_vm9 = vcmp.eq.s32.totalorder %v627_v11, 0  ;;  %v559_v20 = vpack.c.bf16 %v544_v2, %v543_v50  ;;  %v1032_v23 = vsel %vm1023_vm3, %v1013_v55, %v1014_v9  ;;  %v548_v50 = vld [vmem:[%s3577_s25 + $0x58] sm:$0xff]  ;;  %v550_v11 = vld [vmem:[%s3577_s25 + $0x68] sm:$0xff] }
  0x26   : > { %v799_v17 = vsel %vm789_vm1, %v778_v56, %v779_v12  ;;  %v1031_v19 = vsel %vm1023_vm3, %v1014_v9, %v1015_v14  ;;  %vm1047_vm10 = vcmp.eq.s32.totalorder %v634_v13, 15  ;;  %v573_v30 = vadd.s32 64, %v3568_v4 }
  0x27   : > { %v798_v21 = vsel %vm789_vm1, %v779_v12, %v780_v16  ;;  %v828_v22 = vsel %vm812_vm9, 0.0, %v799_v17  ;;  %v1063_v24 = vsel %vm1047_vm10, 0.0, %v1031_v19  ;;  %v574_v31 = vadd.s32 72, %v3568_v4  ;;  %v3345_v17 = vld [vmem:[%s4260_s4 + $0x78] sm:$0xff] }
  0x28   : > { %v843_v25 = vpack.c.bf16 %v798_v21, %v828_v22  ;;  %v1078_v27 = vpack.c.bf16 %v1063_v24, %v1032_v23  ;;  %v1016_v33 = vrot.slane %v546_v28, 1  ;;  %v641_v34 = vand.u32 15, %v573_v30  ;;  %1384 = vmatpush.bf16.msrb.mxu0 %v3345_v17  ;;  %v3336_v24 = vld [vmem:[%s4260_s4 + $0x30] sm:$0xff] }
  0x29   : > { %2893 = vmatmul.msk.bf16.gmra.mxu1 %vm854_vm0, %v557_v40  ;;  %v781_v35 = vrot.slane %v545_v7, 7  ;;  %v648_v36 = vand.u32 15, %v574_v31  ;;  %v1017_v37 = vrot.slane %v547_v32, 1  ;;  %v782_v38 = vrot.slane %v546_v28, 7 }
  0x2a   : > { %vm814_vm11 = vcmp.eq.s32.totalorder %v641_v34, 0  ;;  %v560_v41 = vpack.c.bf16 %v546_v28, %v545_v7  ;;  %v1030_v44 = vsel %vm1023_vm3, %v1015_v14, %v1016_v33  ;;  %v575_v51 = vadd.s32 80, %v3568_v4  ;;  %v3710_v14 = vld [vmem:[%s3577_s25 + $0x70] sm:$0xff] }
  0x2b   : > { %v797_v39 = vsel %vm789_vm1, %v780_v16, %v781_v35  ;;  %v1029_v40 = vsel %vm1023_vm3, %v1016_v33, %v1017_v37  ;;  %vm1049_vm12 = vcmp.eq.s32.totalorder %v648_v36, 15  ;;  %v796_v42 = vsel %vm789_vm1, %v781_v35, %v782_v38  ;;  %v3337_v16 = vld [vmem:[%s4260_s4 + $0x38] sm:$0xff]  ;;  %v3343_v33 = vld [vmem:[%s4260_s4 + $0x68] sm:$0xff] }
  0x2c   : > { %v830_v43 = vsel %vm814_vm11, 0.0, %v797_v39  ;;  %v576_v52 = vadd.s32 88, %v3568_v4  ;;  %v1018_v54 = vrot.slane %v548_v50, 1  ;;  %v655_v55 = vand.u32 15, %v575_v51  ;;  %1270 = vmatpush.bf16.msra.mxu3 %v3337_v16 }
  0x2d   : > { %v783_v56 = vrot.slane %v547_v32, 7  ;;  %v1019_v58 = vrot.slane %v549_v53, 1  ;;  %v561_v62 = vpack.c.bf16 %v548_v50, %v547_v32  ;;  %v577_v12 = vadd.s32 96, %v3568_v4  ;;  %v3335_v32 = vld [vmem:[%s4260_s4 + $0x28] sm:$0xff] }
  0x2e   : > { %2881 = vmatmul.msk.bf16.gmra.mxu0 %vm854_vm0, %v841_v45  ;;  %2907 = vmatmul.msk.bf16.gmra.mxu2 %vm854_vm0, %v1076_v46  ;;  %v1065_v45 = vsel %vm1049_vm12, 0.0, %v1029_v40  ;;  %v844_v46 = vpack.c.bf16 %v796_v42, %v830_v43  ;;  %v662_v57 = vand.u32 15, %v576_v52  ;;  %vm816_vm13 = vcmp.eq.s32.totalorder %v655_v55, 0  ;;  %v3334_v40 = vld [vmem:[%s4260_s4 + $0x20] sm:$0xff]  ;;  %v3332_v52 = vld [vmem:[%s4260_s4 + $0x10] sm:$0xff] }
  0x2f   : > { %v1079_v47 = vpack.c.bf16 %v1065_v45, %v1030_v44  ;;  %v795_v60 = vsel %vm789_vm1, %v782_v38, %v783_v56  ;;  %v1027_v61 = vsel %vm1023_vm3, %v1018_v54, %v1019_v58  ;;  %v578_v13 = vadd.s32 104, %v3568_v4  ;;  %v3333_v44 = vld [vmem:[%s4260_s4 + $0x18] sm:$0xff] }
  0x30   : > { %vm1051_vm14 = vcmp.eq.s32.totalorder %v662_v57, 15  ;;  %v1020_v19 = vrot.slane %v550_v11, 1  ;;  %v785_v21 = vrot.slane %v549_v53, 7  ;;  %v1021_v23 = vrot.slane %v3710_v14, 1  ;;  %1271 = vmatpush.bf16.msra.mxu3 %v3336_v24  ;;  %v3341_v45 = vld [vmem:[%s4260_s4 + $0x58] sm:$0xff] }
  0x31   : > { %v1067_v2 = vsel %vm1051_vm14, 0.0, %v1027_v61  ;;  %v676_v22 = vand.u32 15, %v578_v13  ;;  %v562_v31 = vpack.c.bf16 %v550_v11, %v549_v53  ;;  %v579_v42 = vadd.s32 112, %v3568_v4  ;;  %v3340_v53 = vld [vmem:[%s4260_s4 + $0x50] sm:$0xff]  ;;  %v3798_v13 = vld [vmem:[%s4259_s3] ss:$0 sm:$0xff] }
  0x32   : > { %v1025_v30 = vsel %vm1023_vm3, %v1020_v19, %v1021_v23  ;;  %v1026_v36 = vsel %vm1023_vm3, %v1019_v58, %v1020_v19  ;;  %v580_v43 = vadd.s32 120, %v3568_v4  ;;  %v1022_v51 = vrot.slane %v3585_v10, 1 }
  0x33   : > { %vm1053_vm2 = vcmp.eq.s32.totalorder %v676_v22, 15  ;;  %vm1769_vm7 = vcmask 523264  }
  0x34   : > { %1272 = vmatpush.bf16.msra.mxu3 %v3335_v32  ;;  %v1039_v55 = vsel %vm1023_vm3, %v1022_v51, %v1007_v15  ;;  %v3339_v15 = vld [vmem:[%s4260_s4 + $0x48] sm:$0xff] }
  0x38   : > { %1273 = vmatpush.bf16.msra.mxu3 %v3334_v40 }
  0x39   : > { %2894 = vmatmul.msk.bf16.gmra.mxu1 %vm854_vm0, %v558_v59  ;;  %v784_v59 = vrot.slane %v548_v50, 7  ;;  %v690_v50 = vand.u32 15, %v580_v43 }
  0x3b   : > { %v794_v63 = vsel %vm789_vm1, %v783_v56, %v784_v59  ;;  %v793_v28 = vsel %vm789_vm1, %v784_v59, %v785_v21  ;;  %vm1055_vm5 = vcmp.eq.s32.totalorder %v690_v50, 15  ;;  %v563_v56 = vpack.c.bf16 %v3585_v10, %v3710_v14 }
  0x3c   : > { %1274 = vmatpush.bf16.msra.mxu3 %v3333_v44  ;;  %v1024_v59 = vsel %vm1023_vm3, %v1021_v23, %v1022_v51 }
  0x3e   : > { %2882 = vmatmul.msk.bf16.gmra.mxu0 %vm854_vm0, %v842_v0  ;;  %2908 = vmatmul.msk.bf16.gmra.mxu2 %vm854_vm0, %v1077_v1  ;;  %v832_v0 = vsel %vm816_vm13, 0.0, %v795_v60  ;;  %v1028_v1 = vsel %vm1023_vm3, %v1017_v37, %v1018_v54  ;;  %v1069_v37 = vsel %vm1053_vm2, 0.0, %v1025_v30  ;;  %v1071_v60 = vsel %vm1055_vm5, 0.0, %v1039_v55 }
  0x3f   : > { %v845_v7 = vpack.c.bf16 %v794_v63, %v832_v0  ;;  %v1080_v9 = vpack.c.bf16 %v1067_v2, %v1028_v1  ;;  %v1081_v39 = vpack.c.bf16 %v1069_v37, %v1026_v36  ;;  %v1082_v61 = vpack.c.bf16 %v1071_v60, %v1024_v59 }
  0x40   : > { %1275 = vmatpush.bf16.msra.mxu3 %v3332_v52 }
  0x44   : > { %1276 = vmatpush.bf16.msra.mxu3 %v3331_v8 }
  0x49   : > { %2895 = vmatmul.msk.bf16.gmra.mxu1 %vm854_vm0, %v559_v20  ;;  %v669_v20 = vand.u32 15, %v577_v12 }
  0x4b   : > { %vm818_vm15 = vcmp.eq.s32.totalorder %v669_v20, 0 }
  0x4c   : > { %v834_v35 = vsel %vm818_vm15, 0.0, %v793_v28 }
  0x4e   : > { %2883 = vmatmul.msk.bf16.gmra.mxu0 %vm854_vm0, %v843_v25  ;;  %2909 = vmatmul.msk.bf16.gmra.mxu2 %vm854_vm0, %v1078_v27  ;;  %v3344_v25 = vld [vmem:[%s4260_s4 + $0x70] sm:$0xff]  ;;  %v786_v27 = vrot.slane %v550_v11, 7 }
  0x4f   : > { %1385 = vmatpush.bf16.msrb.mxu0 %v3344_v25 }
  0x50   : > { %v792_v34 = vsel %vm789_vm1, %v785_v21, %v786_v27 }
  0x51   : > { %v846_v38 = vpack.c.bf16 %v792_v34, %v834_v35 }
  0x53   : > { %1386 = vmatpush.bf16.msrb.mxu0 %v3343_v33 }
  0x59   : > { %2896 = vmatmul.msk.bf16.gmra.mxu1 %vm854_vm0, %v560_v41  ;;  %v3342_v41 = vld [vmem:[%s4260_s4 + $0x60] sm:$0xff] }
  0x5a   : > { %1387 = vmatpush.bf16.msrb.mxu0 %v3342_v41 }
  0x5e   : > { %2884 = vmatmul.msk.bf16.gmra.mxu0 %vm854_vm0, %v844_v46  ;;  %2910 = vmatmul.msk.bf16.gmra.mxu2 %vm854_vm0, %v1079_v47  ;;  %v683_v46 = vand.u32 15, %v579_v42  ;;  %v787_v47 = vrot.slane %v3710_v14, 7 }
  0x5f   : > { %1388 = vmatpush.bf16.msrb.mxu0 %v3341_v45 }
  0x60   : > { %v791_v54 = vsel %vm789_vm1, %v786_v27, %v787_v47  ;;  %vm820_vm4 = vcmp.eq.s32.totalorder %v683_v46, 0  ;;  %v790_v57 = vsel %vm789_vm1, %v787_v47, %v788_v18  ;;  %v3330_v18 = vld [vmem:[%s4260_s4] sm:$0xff] }
  0x61   : > { %v836_v58 = vsel %vm820_vm4, 0.0, %v791_v54  ;;  %1277 = vmatpush.bf16.msra.mxu3 %v3330_v18 }
  0x62   : > { %v847_v10 = vpack.c.bf16 %v790_v57, %v836_v58 }
  0x63   : > { %1389 = vmatpush.bf16.msrb.mxu0 %v3340_v53 }
  0x67   : > { %1390 = vmatpush.bf16.msrb.mxu0 %v3339_v15 }
  0x69   : > { %2897 = vmatmul.msk.bf16.gmra.mxu1 %vm854_vm0, %v561_v62  ;;  %v3338_v62 = vld [vmem:[%s4260_s4 + $0x40] sm:$0xff] }
  0x6b   : > { %1391 = vmatpush.bf16.msrb.mxu0 %v3338_v62 }
  0x6e   : > { %2885 = vmatmul.msk.bf16.gmra.mxu0 %vm854_vm0, %v845_v7  ;;  %2911 = vmatmul.msk.bf16.gmra.mxu2 %vm854_vm0, %v1080_v9 }
  0x79   : > { %2898 = vmatmul.msk.bf16.gmra.mxu1 %vm854_vm0, %v562_v31 }
  0x7e   : > { %2886 = vmatmul.msk.bf16.gmra.mxu0 %vm854_vm0, %v846_v38  ;;  %2912 = vmatmul.msk.bf16.gmra.mxu2 %vm854_vm0, %v1081_v39 }
  0x89   : > { %2899 = vmatmul.msk.bf16.gmra.mxu1 %vm854_vm0, %v563_v56 }
  0x8e   : > { %2887 = vmatmul.msk.bf16.gmra.mxu0 %vm854_vm0, %v847_v10  ;;  %2913 = vmatmul.msk.bf16.gmra.mxu2 %vm854_vm0, %v1082_v61 }
  0x96   : > { %v967_v63 = vpop.f32.mrf.mxu1 }
  0x9b   : > { %v888_v0 = vpop.f32.mrf.mxu0 }
  0x9c   : > { %v968_v9 = vadd.f32 %v967_v63, %v888_v0 }
  0x9e   : > { %v969_v1 = vpop.f32.mrf.mxu1 }
  0xa1   : > { %v1122_v2 = vpop.f32.mrf.mxu2 }
  0xa2   : > { %v1162_v12 = vadd.f32 %v1122_v2, %v968_v9 }
  0xa3   : > { %v890_v7 = vpop.f32.mrf.mxu0 }
  0xa4   : > { %v970_v14 = vadd.f32 %v969_v1, %v890_v7  ;;  %v1182_v20 = vadd.f32 %v3798_v13, %v1162_v12 }
  0xa6   : > { %v972_v11 = vpop.f32.mrf.mxu1 }
  0xa9   : > { %v1124_v16 = vpop.f32.mrf.mxu2 }
  0xaa   : > { %v1163_v17 = vadd.f32 %v1124_v16, %v970_v14 }
  0xab   : > { %v893_v19 = vpop.f32.mrf.mxu0 }
  0xac   : > { %v1183_v21 = vadd.f32 %v3798_v13, %v1163_v17  ;;  %v973_v27 = vadd.f32 %v972_v11, %v893_v19 }
  0xae   : > { %v974_v22 = vpop.f32.mrf.mxu1  ;;  %v1214_v23 = vpack.c.bf16 %v1183_v21, %v1182_v20 }
  0xb0   : > { %1278 = vmatmul.bf16.vlgmr.msra.gmra.mxu3 %v1214_v23  ;;  %1392 = vmatmul.bf16.vlgmr.msrb.gmra.mxu0 %v1214_v23 }
  0xb1   : > { %v1127_v24 = vpop.f32.mrf.mxu2 }
  0xb2   : > { %v1164_v30 = vadd.f32 %v1127_v24, %v973_v27 }
  0xb3   : > { %v895_v25 = vpop.f32.mrf.mxu0 }
  0xb4   : > { %v975_v31 = vadd.f32 %v974_v22, %v895_v25  ;;  %v1184_v35 = vadd.f32 %v3798_v13, %v1164_v30 }
  0xb6   : > { %v977_v28 = vpop.f32.mrf.mxu1 }
  0xb9   : > { %v1129_v32 = vpop.f32.mrf.mxu2 }
  0xba   : > { %v1165_v33 = vadd.f32 %v1129_v32, %v975_v31 }
  0xbb   : > { %v898_v34 = vpop.f32.mrf.mxu0 }
  0xbc   : > { %v1185_v36 = vadd.f32 %v3798_v13, %v1165_v33  ;;  %v978_v41 = vadd.f32 %v977_v28, %v898_v34 }
  0xbe   : > { %v979_v37 = vpop.f32.mrf.mxu1  ;;  %v1215_v38 = vpack.c.bf16 %v1185_v36, %v1184_v35 }
  0xc0   : > { %1283 = vmatmul.bf16.gmra.mxu3 %v1215_v38  ;;  %1397 = vmatmul.bf16.gmra.mxu0 %v1215_v38 }
  0xc1   : > { %v1132_v39 = vpop.f32.mrf.mxu2 }
  0xc2   : > { %v1166_v43 = vadd.f32 %v1132_v39, %v978_v41 }
  0xc3   : > { %v900_v40 = vpop.f32.mrf.mxu0 }
  0xc4   : > { %v980_v44 = vadd.f32 %v979_v37, %v900_v40  ;;  %v1186_v50 = vadd.f32 %v3798_v13, %v1166_v43 }
  0xc6   : > { %v982_v42 = vpop.f32.mrf.mxu1 }
  0xc9   : > { %v1134_v45 = vpop.f32.mrf.mxu2 }
  0xca   : > { %v1167_v46 = vadd.f32 %v1134_v45, %v980_v44 }
  0xcb   : > { %v903_v47 = vpop.f32.mrf.mxu0 }
  0xcc   : > { %v1187_v51 = vadd.f32 %v3798_v13, %v1167_v46  ;;  %v983_v56 = vadd.f32 %v982_v42, %v903_v47 }
  0xce   : > { %v984_v52 = vpop.f32.mrf.mxu1  ;;  %v1216_v53 = vpack.c.bf16 %v1187_v51, %v1186_v50 }
  0xd0   : > { %1288 = vmatmul.bf16.gmra.mxu3 %v1216_v53  ;;  %1402 = vmatmul.bf16.gmra.mxu0 %v1216_v53 }
  0xd1   : > { %v1137_v54 = vpop.f32.mrf.mxu2 }
  0xd2   : > { %v1168_v58 = vadd.f32 %v1137_v54, %v983_v56 }
  0xd3   : > { %v905_v55 = vpop.f32.mrf.mxu0 }
  0xd4   : > { %v985_v59 = vadd.f32 %v984_v52, %v905_v55  ;;  %v1188_v10 = vadd.f32 %v3798_v13, %v1168_v58 }
  0xd6   : > { %v987_v57 = vpop.f32.mrf.mxu1 }
  0xd9   : > { %v1139_v60 = vpop.f32.mrf.mxu2 }
  0xda   : > { %v1169_v8 = vadd.f32 %v1139_v60, %v985_v59 }
  0xdb   : > { %v908_v15 = vpop.f32.mrf.mxu0 }
  0xdc   : > { %v1189_v61 = vadd.f32 %v3798_v13, %v1169_v8  ;;  %v988_v1 = vadd.f32 %v987_v57, %v908_v15 }
  0xde   : > { %v989_v18 = vpop.f32.mrf.mxu1  ;;  %v1217_v62 = vpack.c.bf16 %v1189_v61, %v1188_v10 }
  0xe0   : > { %1293 = vmatmul.bf16.gmra.mxu3 %v1217_v62  ;;  %1407 = vmatmul.bf16.gmra.mxu0 %v1217_v62 }
  0xe1   : > { %v1142_v63 = vpop.f32.mrf.mxu2 }
  0xe2   : > { %v1170_v7 = vadd.f32 %v1142_v63, %v988_v1 }
  0xe3   : > { %v910_v0 = vpop.f32.mrf.mxu0 }
  0xe4   : > { %v990_v9 = vadd.f32 %v989_v18, %v910_v0  ;;  %v1190_v16 = vadd.f32 %v3798_v13, %v1170_v7 }
  0xe6   : > { %v992_v2 = vpop.f32.mrf.mxu1 }
  0xe9   : > { %v1144_v11 = vpop.f32.mrf.mxu2 }
  0xea   : > { %v1171_v12 = vadd.f32 %v1144_v11, %v990_v9 }
  0xeb   : > { %v913_v14 = vpop.f32.mrf.mxu0 }
  0xec   : > { %v1191_v17 = vadd.f32 %v3798_v13, %v1171_v12  ;;  %v993_v23 = vadd.f32 %v992_v2, %v913_v14 }
  0xee   : > { %v1218_v19 = vpack.c.bf16 %v1191_v17, %v1190_v16  ;;  %v994_v20 = vpop.f32.mrf.mxu1 }
  0xf0   : > { %1298 = vmatmul.bf16.gmra.mxu3 %v1218_v19  ;;  %1412 = vmatmul.bf16.gmra.mxu0 %v1218_v19 }
  0xf1   : > { %v1147_v21 = vpop.f32.mrf.mxu2 }
  0xf2   : > { %v1172_v24 = vadd.f32 %v1147_v21, %v993_v23 }
  0xf3   : > { %v915_v22 = vpop.f32.mrf.mxu0 }
  0xf4   : > { %v995_v25 = vadd.f32 %v994_v20, %v915_v22  ;;  %v1192_v32 = vadd.f32 %v3798_v13, %v1172_v24 }
  0xf6   : > { %v997_v27 = vpop.f32.mrf.mxu1 }
  0xf9   : > { %v1149_v28 = vpop.f32.mrf.mxu2 }
  0xfa   : > { %v1173_v30 = vadd.f32 %v1149_v28, %v995_v25 }
  0xfb   : > { %v918_v31 = vpop.f32.mrf.mxu0 }
  0xfc   : > { %v1193_v33 = vadd.f32 %v3798_v13, %v1173_v30  ;;  %v998_v38 = vadd.f32 %v997_v27, %v918_v31 }
  0xfe   : > { %v1219_v34 = vpack.c.bf16 %v1193_v33, %v1192_v32  ;;  %v999_v36 = vpop.f32.mrf.mxu1 }
 0x100   : > { %1303 = vmatmul.bf16.gmra.mxu3 %v1219_v34  ;;  %1417 = vmatmul.bf16.gmra.mxu0 %v1219_v34 }
 0x101   : > { %v1152_v35 = vpop.f32.mrf.mxu2 }
 0x102   : > { %v1174_v39 = vadd.f32 %v1152_v35, %v998_v38 }
 0x103   : > { %v920_v37 = vpop.f32.mrf.mxu0 }
 0x104   : > { %v1000_v40 = vadd.f32 %v999_v36, %v920_v37  ;;  %v1194_v44 = vadd.f32 %v3798_v13, %v1174_v39 }
 0x106   : > { %v1002_v46 = vpop.f32.mrf.mxu1 }
 0x109   : > { %v1154_v41 = vpop.f32.mrf.mxu2 }
 0x10a   : > { %v1175_v42 = vadd.f32 %v1154_v41, %v1000_v40 }
 0x10b   : > { %v923_v43 = vpop.f32.mrf.mxu0 }
 0x10c   : > { %v1195_v45 = vadd.f32 %v3798_v13, %v1175_v42  ;;  %v1003_v51 = vadd.f32 %v1002_v46, %v923_v43 }
 0x10e   : > { %v1220_v47 = vpack.c.bf16 %v1195_v45, %v1194_v44  ;;  %v1004_v53 = vpop.f32.mrf.mxu1 }
 0x110   : > { %1308 = vmatmul.bf16.gmra.mxu3 %v1220_v47  ;;  %1422 = vmatmul.bf16.gmra.mxu0 %v1220_v47 }
 0x111   : > { %v1157_v50 = vpop.f32.mrf.mxu2 }
 0x112   : > { %v1176_v54 = vadd.f32 %v1157_v50, %v1003_v51 }
 0x113   : > { %v925_v52 = vpop.f32.mrf.mxu0 }
 0x114   : > { %v1005_v55 = vadd.f32 %v1004_v53, %v925_v52  ;;  %v1196_v58 = vadd.f32 %v3798_v13, %v1176_v54 }
 0x119   : > { %v1159_v56 = vpop.f32.mrf.mxu2 }
 0x11a   : > { %v1177_v57 = vadd.f32 %v1159_v56, %v1005_v55 }
 0x11c   : > { %v1197_v59 = vadd.f32 %v3798_v13, %v1177_v57 }
 0x11e   : > { %v1221_v60 = vpack.c.bf16 %v1197_v59, %v1196_v58 }
 0x120   : > { %1313 = vmatmul.bf16.gmra.mxu3 %v1221_v60  ;;  %1427 = vmatmul.bf16.gmra.mxu0 %v1221_v60 }
 0x12d   : > { %v1393_v8 = vpop.f32.mrf.mxu0 }
 0x133   : > { %v1279_v15 = vpop.f32.mrf.mxu3 }
 0x134   : > { %v3816_v10 = vmax.f32 %v1279_v15, %v1393_v8 }
 0x135   : > { %v1395_v61 = vpop.f32.mrf.mxu0 }
 0x136   : > { %v1449_v0 = vrot.slane %v3816_v10, 1 }
 0x13b   : > { %v1281_v18 = vpop.f32.mrf.mxu3 }
 0x13c   : > { %v1434_v62 = vmax.f32 %v1281_v18, %v1395_v61 }
 0x13d   : > { %v1398_v63 = vpop.f32.mrf.mxu0 }
 0x13e   : > { %v1450_v1 = vrot.slane %v1434_v62, 1 }
 0x140   : > { %v1479_v2 = vsel %vm1023_vm3, %v1449_v0, %v1450_v1 }
 0x141   : > { %v1481_v13 = vmax.f32 %v3816_v10, %v1479_v2 }
 0x143   : > { %v1284_v7 = vpop.f32.mrf.mxu3 }
 0x144   : > { %v1435_v9 = vmax.f32 %v1284_v7, %v1398_v63 }
 0x145   : > { %v1400_v11 = vpop.f32.mrf.mxu0 }
 0x146   : > { %v1451_v12 = vrot.slane %v1435_v9, 1 }
 0x148   : > { %v1478_v14 = vsel %vm1023_vm3, %v1450_v1, %v1451_v12 }
 0x149   : > { %v1482_v16 = vmax.f32 %v1434_v62, %v1478_v14 }
 0x14b   : > { %v1286_v17 = vpop.f32.mrf.mxu3  ;;  %v3826_v19 = vpack.c.bf16 %v1482_v16, %v1481_v13 }
 0x14c   : > { %v1436_v20 = vmax.f32 %v1286_v17, %v1400_v11 }
 0x14d   : > { %v1403_v21 = vpop.f32.mrf.mxu0 }
 0x14e   : > { %v1452_v22 = vrot.slane %v1436_v20, 1 }
 0x150   : > { %v1477_v23 = vsel %vm1023_vm3, %v1451_v12, %v1452_v22 }
 0x151   : > { %v1483_v24 = vmax.f32 %v1435_v9, %v1477_v23 }
 0x153   : > { %v1289_v25 = vpop.f32.mrf.mxu3 }
 0x154   : > { %v1437_v27 = vmax.f32 %v1289_v25, %v1403_v21 }
 0x155   : > { %v1405_v28 = vpop.f32.mrf.mxu0 }
 0x156   : > { %v1453_v30 = vrot.slane %v1437_v27, 1 }
 0x158   : > { %v1476_v31 = vsel %vm1023_vm3, %v1452_v22, %v1453_v30 }
 0x159   : > { %v1484_v32 = vmax.f32 %v1436_v20, %v1476_v31 }
 0x15b   : > { %v1291_v33 = vpop.f32.mrf.mxu3  ;;  %v3832_v34 = vpack.c.bf16 %v1484_v32, %v1483_v24 }
 0x15c   : > { %v1438_v35 = vmax.f32 %v1291_v33, %v1405_v28 }
 0x15d   : > { %v1408_v36 = vpop.f32.mrf.mxu0 }
 0x15e   : > { %v1454_v37 = vrot.slane %v1438_v35, 1 }
 0x160   : > { %v1475_v38 = vsel %vm1023_vm3, %v1453_v30, %v1454_v37 }
 0x161   : > { %v1485_v39 = vmax.f32 %v1437_v27, %v1475_v38 }
 0x163   : > { %v1294_v40 = vpop.f32.mrf.mxu3 }
 0x164   : > { %v1439_v41 = vmax.f32 %v1294_v40, %v1408_v36 }
 0x165   : > { %v1410_v42 = vpop.f32.mrf.mxu0 }
 0x166   : > { %v1455_v43 = vrot.slane %v1439_v41, 1 }
 0x168   : > { %v1474_v44 = vsel %vm1023_vm3, %v1454_v37, %v1455_v43 }
 0x169   : > { %v1486_v45 = vmax.f32 %v1438_v35, %v1474_v44 }
 0x16b   : > { %v1296_v46 = vpop.f32.mrf.mxu3  ;;  %v3838_v47 = vpack.c.bf16 %v1486_v45, %v1485_v39 }
 0x16c   : > { %v1440_v50 = vmax.f32 %v1296_v46, %v1410_v42 }
 0x16d   : > { %v1413_v51 = vpop.f32.mrf.mxu0 }
 0x16e   : > { %v1456_v52 = vrot.slane %v1440_v50, 1 }
 0x170   : > { %v1473_v53 = vsel %vm1023_vm3, %v1455_v43, %v1456_v52 }
 0x171   : > { %v1487_v54 = vmax.f32 %v1439_v41, %v1473_v53 }
 0x173   : > { %v1299_v55 = vpop.f32.mrf.mxu3 }
 0x174   : > { %v1441_v56 = vmax.f32 %v1299_v55, %v1413_v51 }
 0x175   : > { %v1415_v57 = vpop.f32.mrf.mxu0 }
 0x176   : > { %v1457_v58 = vrot.slane %v1441_v56, 1 }
 0x178   : > { %v1472_v59 = vsel %vm1023_vm3, %v1456_v52, %v1457_v58 }
 0x179   : > { %v1488_v60 = vmax.f32 %v1440_v50, %v1472_v59  ;;  %v3351_v59 = vld [vmem:[%s4262_s6 + $0x28] sm:$0xff] }
 0x17b   : > { %v1301_v8 = vpop.f32.mrf.mxu3  ;;  %v1508_v15 = vpack.c.bf16 %v1488_v60, %v1487_v54  ;;  %v3350_v60 = vld [vmem:[%s4262_s6 + $0x20] sm:$0xff] }
 0x17c   : > { %v1442_v36 = vmax.f32 %v1301_v8, %v1415_v57  ;;  %v3346_v57 = vld [vmem:[%s4261_s5] sm:$0xff]  ;;  %v3361_v8 = vld [vmem:[%s4262_s6 + $0x58] sm:$0xff] }
 0x17d   : > { %v1418_v61 = vpop.f32.mrf.mxu0 }
 0x17e   : > { %v1458_v42 = vrot.slane %v1442_v36, 1 }
 0x180   : > { %v1471_v51 = vsel %vm1023_vm3, %v1457_v58, %v1458_v42  ;;  %v3347_v58 = vld [vmem:[%s4261_s5 + $0x8] sm:$0xff] }
 0x181   : > { %v1489_v54 = vmax.f32 %v1441_v56, %v1471_v51  ;;  %v3353_v56 = vld [vmem:[%s4262_s6 + $0x38] sm:$0xff] }
 0x182   : > { %1851 = vmatpush.bf16.msrb.mxu3 %v3353_v56 }
 0x183   : > { %v1304_v18 = vpop.f32.mrf.mxu3 }
 0x184   : > { %v1443_v27 = vmax.f32 %v1304_v18, %v1418_v61  ;;  %v3359_v61 = vld [vmem:[%s4262_s6 + $0x48] sm:$0xff]  ;;  %v3358_v18 = vld [vmem:[%s4262_s6 + $0x40] sm:$0xff] }
 0x185   : > { %v1420_v62 = vpop.f32.mrf.mxu0 }
 0x186   : > { %v1459_v41 = vrot.slane %v1443_v27, 1 }
 0x188   : > { %v1470_v46 = vsel %vm1023_vm3, %v1458_v42, %v1459_v41  ;;  %v1630_v42 = vand.u32 7, %v3617_v29 }
 0x189   : > { %v1490_v53 = vmax.f32 %v1442_v36, %v1470_v46  ;;  %v3355_v36 = vld [vmem:[%s4262_s6 + $0x8] sm:$0xff] }
 0x18a   : > { %vm1895_vm14 = vcmp.eq.s32.totalorder %v1630_v42, 7 }
 0x18b   : > { %v1306_v63 = vpop.f32.mrf.mxu3  ;;  %v1509_v55 = vpack.c.bf16 %v1490_v53, %v1489_v54  ;;  %v1644_v53 = vand.u32 7, %v3639_v49 }
 0x18c   : > { %v1444_v23 = vmax.f32 %v1306_v63, %v1420_v62  ;;  %v3901_v63 = vstv %s1566_s17 }
 0x18d   : > { %v1423_v1 = vpop.f32.mrf.mxu0  ;;  %vm1722_vm4 = vcmp.eq.s32.totalorder %v1644_v53, 0 }
 0x18e   : > { %v1460_v37 = vrot.slane %v1444_v23, 1 }
 0x190   : > { %v1469_v43 = vsel %vm1023_vm3, %v1459_v41, %v1460_v37 }
 0x191   : > { %v1491_v50 = vmax.f32 %v1443_v27, %v1469_v43  ;;  %v3356_v27 = vld [vmem:[%s4262_s6 + $0x10] sm:$0xff] }
 0x193   : > { %v1309_v2 = vpop.f32.mrf.mxu3 }
 0x194   : > { %v1445_v20 = vmax.f32 %v1309_v2, %v1423_v1 }
 0x195   : > { %v1425_v13 = vpop.f32.mrf.mxu0 }
 0x196   : > { %v1461_v28 = vrot.slane %v1445_v20, 1 }
 0x198   : > { %v1468_v10 = vsel %vm1023_vm3, %v1460_v37, %v1461_v28 }
 0x199   : > { %v1492_v45 = vmax.f32 %v1444_v23, %v1468_v10 }
 0x19b   : > { %v1311_v7 = vpop.f32.mrf.mxu3  ;;  %v1510_v52 = vpack.c.bf16 %v1492_v45, %v1491_v50  ;;  %v1637_v50 = vand.u32 7, %v3636_v48 }
 0x19c   : > { %v1446_v14 = vmax.f32 %v1311_v7, %v1425_v13 }
 0x19d   : > { %v1428_v9 = vpop.f32.mrf.mxu0  ;;  %vm1721_vm2 = vcmp.eq.s32.totalorder %v1637_v50, 0 }
 0x19e   : > { %v1462_v24 = vrot.slane %v1446_v14, 1 }
 0x1a0   : > { %v1467_v38 = vsel %vm1023_vm3, %v1461_v28, %v1462_v24 }
 0x1a3   : > { %v1314_v11 = vpop.f32.mrf.mxu3 }
 0x1a4   : > { %v1447_v12 = vmax.f32 %v1314_v11, %v1428_v9 }
 0x1a5   : > { %v1430_v16 = vpop.f32.mrf.mxu0 }
 0x1a6   : > { %v1463_v21 = vrot.slane %v1447_v12, 1 }
 0x1a8   : > { %v1466_v32 = vsel %vm1023_vm3, %v1462_v24, %v1463_v21 }
 0x1a9   : > { %v1494_v40 = vmax.f32 %v1446_v14, %v1466_v32 }
 0x1ab   : > { %v1316_v17 = vpop.f32.mrf.mxu3 }
 0x1ac   : > { %v1448_v22 = vmax.f32 %v1316_v17, %v1430_v16 }
 0x1ae   : > { %v1464_v25 = vrot.slane %v1448_v22, 1 }
 0x1b0   : > { %v1480_v30 = vsel %vm1023_vm3, %v1464_v25, %v1449_v0  ;;  %v1465_v31 = vsel %vm1023_vm3, %v1463_v21, %v1464_v25  ;;  %v1493_v0 = vmax.f32 %v1445_v20, %v1467_v38  ;;  %v3357_v20 = vld [vmem:[%s4262_s6 + $0x18] sm:$0xff] }
 0x1b1   : > { %v1496_v33 = vmax.f32 %v1448_v22, %v1480_v30  ;;  %v1495_v35 = vmax.f32 %v1447_v12, %v1465_v31  ;;  %v1609_v12 = vand.u32 7, %v3568_v4  ;;  %v1616_v22 = vand.u32 7, %v3572_v6  ;;  %1786 = vmatpush.bf16.msrb.mxu2 %v3357_v20 }
 0x1b2   : > { %v1511_v44 = vpack.c.bf16 %v1494_v40, %v1493_v0  ;;  %v1623_v0 = vand.u32 7, %v3614_v26 }
 0x1b3   : > { %v1512_v39 = vpack.c.bf16 %v1496_v33, %v1495_v35  ;;  %vm1892_vm9 = vcmp.eq.s32.totalorder %v1609_v12, 7  ;;  %vm1893_vm10 = vcmp.eq.s32.totalorder %v1616_v22, 7 }
 0x1b4   : > { %vm1894_vm13 = vcmp.eq.s32.totalorder %v1623_v0, 7 }
 0x1b5   : > { %1537 = vmatpush.bf16.msrb.mxu1 %v1512_v39  ;;  %1787 = vmatpush.bf16.msrb.mxu2 %v3356_v27  ;;  %v3354_v39 = vld [vmem:[%s4262_s6] sm:$0xff] }
 0x1b9   : > { %1538 = vmatpush.bf16.msrb.mxu1 %v1511_v44  ;;  %1788 = vmatpush.bf16.msrb.mxu2 %v3355_v36 }
 0x1bd   : > { %1539 = vmatpush.bf16.msrb.mxu1 %v1510_v52  ;;  %1789 = vmatpush.bf16.msrb.mxu2 %v3354_v39 }
 0x1c1   : > { %1540 = vmatpush.bf16.msrb.mxu1 %v1509_v55 }
 0x1c5   : > { %1541 = vmatpush.bf16.msrb.mxu1 %v1508_v15  ;;  %v3360_v15 = vld [vmem:[%s4262_s6 + $0x50] sm:$0xff] }
 0x1c9   : > { %1542 = vmatpush.bf16.msrb.mxu1 %v3838_v47  ;;  %v3352_v47 = vld [vmem:[%s4262_s6 + $0x30] sm:$0xff] }
 0x1ca   : > { %1852 = vmatpush.bf16.msrb.mxu3 %v3352_v47 }
 0x1cd   : > { %1543 = vmatpush.bf16.msrb.mxu1 %v3832_v34  ;;  %v3348_v34 = vld [vmem:[%s4261_s5 + $0x10] sm:$0xff] }
 0x1ce   : > { %1853 = vmatpush.bf16.msrb.mxu3 %v3351_v59 }
 0x1d1   : > { %1544 = vmatpush.bf16.msrb.mxu1 %v3826_v19  ;;  %v3349_v19 = vld [vmem:[%s4261_s5 + $0x18] sm:$0xff] }
 0x1d2   : > { %1854 = vmatpush.bf16.msrb.mxu3 %v3350_v60 }
 0x1d4   : > { %1545 = vmatmul.bf16.vlgmr.msrb.gmra.mxu1 %v3346_v57 }
 0x1d5   : > { %1961 = vmatpush.bf16.msra.mxu1 %v3361_v8 }
 0x1d9   : > { %1962 = vmatpush.bf16.msra.mxu1 %v3360_v15 }
 0x1dd   : > { %1963 = vmatpush.bf16.msra.mxu1 %v3359_v61 }
 0x1e1   : > { %1964 = vmatpush.bf16.msra.mxu1 %v3358_v18 }
 0x1e4   : > { %1550 = vmatmul.bf16.gmra.mxu1 %v3347_v58 }
 0x1f4   : > { %1555 = vmatmul.bf16.gmra.mxu1 %v3348_v34 }
 0x204   : > { %1560 = vmatmul.bf16.gmra.mxu1 %v3349_v19 }
 0x251   : > { %v1546_v62 = vpop.f32.mrf.mxu1 }
 0x252   : > { %v1576_v1 = vmul.f32 %v3901_v63, %v1546_v62  ;;  %vm1567_vm0 = vcmp.ge.f32.partialorder %v1546_v62, 0.0 }
 0x254   : > { %v3905_v7 = vsel %vm1567_vm0, %v1546_v62, %v1576_v1  ;;  %vm1896_vm0 = vcmp.eq.s32.totalorder %v1637_v50, 7 }
 0x255   : > { %v1876_v21 = vrot.slane %v3905_v7, 1 }
 0x259   : > { %v1548_v2 = vpop.f32.mrf.mxu1 }
 0x25a   : > { %vm1568_vm6 = vcmp.ge.f32.partialorder %v1548_v2, 0.0  ;;  %v1577_v13 = vmul.f32 %v3901_v63, %v1548_v2 }
 0x25c   : > { %v3907_v9 = vsel %vm1568_vm6, %v1548_v2, %v1577_v13  ;;  %vm1897_vm6 = vcmp.eq.s32.totalorder %v1644_v53, 7  ;;  %v1651_v13 = vand.u32 7, %v3657_v3 }
 0x25d   : > { %v1601_v11 = vpack.c.bf16 %v3907_v9, %v3905_v7  ;;  %v1877_v14 = vrot.slane %v3907_v9, 1 }
 0x25f   : > { %3054 = vmatmul.msk.bf16.vlgmr.msrb.gmra.mxu3 %vm1769_vm7, %v1601_v11  ;;  %v1890_v24 = vsel %vm1023_vm3, %v1876_v21, %v1877_v14  ;;  %v1702_v11 = vrot.slane %v3907_v9, 7 }
 0x260   : > { %v1900_v30 = vsel %vm1892_vm9, 0.0, %v1890_v24  ;;  %vm3988_vm9 = vcmp.eq.s32.totalorder %v1616_v22, 0 }
 0x261   : > { %v1551_v16 = vpop.f32.mrf.mxu1 }
 0x262   : > { %vm1569_vm8 = vcmp.ge.f32.partialorder %v1551_v16, 0.0  ;;  %v1578_v17 = vmul.f32 %v3901_v63, %v1551_v16 }
 0x264   : > { %v3920_v23 = vsel %vm1569_vm8, %v1551_v16, %v1578_v17  ;;  %v1658_v17 = vand.u32 7, %v3660_v5 }
 0x265   : > { %v1878_v25 = vrot.slane %v3920_v23, 1 }
 0x267   : > { %v1889_v28 = vsel %vm1023_vm3, %v1877_v14, %v1878_v25 }
 0x268   : > { %v1901_v31 = vsel %vm1893_vm10, 0.0, %v1889_v28  ;;  %vm3994_vm10 = vcmp.eq.s32.totalorder %v1651_v13, 0 }
 0x269   : > { %v1917_v32 = vpack.c.bf16 %v1901_v31, %v1900_v30  ;;  %v1553_v33 = vpop.f32.mrf.mxu1 }
 0x26a   : > { %vm1570_vm11 = vcmp.ge.f32.partialorder %v1553_v33, 0.0  ;;  %v1579_v35 = vmul.f32 %v3901_v63, %v1553_v33 }
 0x26b   : > { %3082 = vmatmul.msk.bf16.vlgmr.msra.gmra.mxu1 %vm1769_vm7, %v1917_v32 }
 0x26c   : > { %v3941_v37 = vsel %vm1570_vm11, %v1553_v33, %v1579_v35  ;;  %vm4000_vm11 = vcmp.eq.s32.totalorder %v1609_v12, 0 }
 0x26d   : > { %v1602_v38 = vpack.c.bf16 %v3941_v37, %v3920_v23  ;;  %v1879_v40 = vrot.slane %v3941_v37, 1  ;;  %v1704_v56 = vrot.slane %v3941_v37, 7  ;;  %v3377_v37 = vld [vmem:[%s4264_s8 + $0x78] sm:$0xff] }
 0x26e   : > { %2168 = vmatpush.bf16.msra.mxu3 %v3377_v37 }
 0x26f   : > { %3055 = vmatmul.msk.bf16.gmra.mxu3 %vm1769_vm7, %v1602_v38  ;;  %v1888_v45 = vsel %vm1023_vm3, %v1878_v25, %v1879_v40  ;;  %v1701_v25 = vrot.slane %v3905_v7, 7  ;;  %v1703_v7 = vrot.slane %v3920_v23, 7  ;;  %v3369_v23 = vld [vmem:[%s4264_s8 + $0x38] sm:$0xff] }
 0x270   : > { %v1902_v51 = vsel %vm1894_vm13, 0.0, %v1888_v45  ;;  %vm4008_vm13 = vcmp.eq.s32.totalorder %v1658_v17, 7  ;;  %2074 = vmatpush.bf16.msra.mxu2 %v3369_v23 }
 0x271   : > { %v1556_v41 = vpop.f32.mrf.mxu1  ;;  %v1715_v3 = vsel %vm789_vm1, %v1701_v25, %v1702_v11 }
 0x272   : > { %vm1571_vm12 = vcmp.ge.f32.partialorder %v1556_v41, 0.0  ;;  %v1580_v10 = vmul.f32 %v3901_v63, %v1556_v41  ;;  %v1726_v39 = vsel %vm3988_vm9, 0.0, %v1715_v3 }
 0x274   : > { %v1588_v43 = vsel %vm1571_vm12, %v1556_v41, %v1580_v10  ;;  %vm4004_vm12 = vcmp.eq.s32.totalorder %v1651_v13, 7 }
 0x275   : > { %v1880_v44 = vrot.slane %v1588_v43, 1  ;;  %v1705_v54 = vrot.slane %v1588_v43, 7 }
 0x277   : > { %v1887_v46 = vsel %vm1023_vm3, %v1879_v40, %v1880_v44  ;;  %v1712_v48 = vsel %vm789_vm1, %v1704_v56, %v1705_v54 }
 0x278   : > { %v1903_v52 = vsel %vm1895_vm14, 0.0, %v1887_v46  ;;  %v1729_v59 = vsel %vm1721_vm2, 0.0, %v1712_v48  ;;  %vm1724_vm14 = vcmp.eq.s32.totalorder %v1658_v17, 0  ;;  %vm1719_vm2 = vcmp.eq.s32.totalorder %v1623_v0, 0  ;;  %v3368_v0 = vld [vmem:[%s4264_s8 + $0x30] sm:$0xff]  ;;  %v3365_v48 = vld [vmem:[%s4264_s8 + $0x18] sm:$0xff] }
 0x279   : > { %v1558_v55 = vpop.f32.mrf.mxu1  ;;  %v1918_v57 = vpack.c.bf16 %v1903_v52, %v1902_v51  ;;  %2075 = vmatpush.bf16.msra.mxu2 %v3368_v0 }
 0x27a   : > { %vm1572_vm15 = vcmp.ge.f32.partialorder %v1558_v55, 0.0  ;;  %v1581_v58 = vmul.f32 %v3901_v63, %v1558_v55 }
 0x27b   : > { %3083 = vmatmul.msk.bf16.gmra.mxu1 %vm1769_vm7, %v1918_v57 }
 0x27c   : > { %v1589_v34 = vsel %vm1572_vm15, %v1558_v55, %v1581_v58  ;;  %vm1720_vm15 = vcmp.eq.s32.totalorder %v1630_v42, 0  ;;  %v3376_v42 = vld [vmem:[%s4264_s8 + $0x70] sm:$0xff] }
 0x27d   : > { %v1706_v19 = vrot.slane %v1589_v34, 7  ;;  %v1603_v47 = vpack.c.bf16 %v1589_v34, %v1588_v43  ;;  %v1881_v8 = vrot.slane %v1589_v34, 1  ;;  %2169 = vmatpush.bf16.msra.mxu3 %v3376_v42  ;;  %v3375_v34 = vld [vmem:[%s4264_s8 + $0x68] sm:$0xff] }
 0x27f   : > { %3056 = vmatmul.msk.bf16.gmra.mxu3 %vm1769_vm7, %v1603_v47  ;;  %v1711_v49 = vsel %vm789_vm1, %v1705_v54, %v1706_v19  ;;  %v1886_v2 = vsel %vm1023_vm3, %v1880_v44, %v1881_v8  ;;  %v1714_v54 = vsel %vm789_vm1, %v1702_v11, %v1703_v7  ;;  %v3374_v47 = vld [vmem:[%s4264_s8 + $0x60] sm:$0xff] }
 0x280   : > { %v1730_v60 = vsel %vm1722_vm4, 0.0, %v1711_v49  ;;  %v1904_v20 = vsel %vm1896_vm0, 0.0, %v1886_v2  ;;  %v1727_v57 = vsel %vm1719_vm2, 0.0, %v1714_v54  ;;  %v3373_v49 = vld [vmem:[%s4264_s8 + $0x58] sm:$0xff] }
 0x281   : > { %v1561_v15 = vpop.f32.mrf.mxu1  ;;  %v1743_v61 = vpack.c.bf16 %v1730_v60, %v1729_v59  ;;  %2170 = vmatpush.bf16.msra.mxu3 %v3375_v34  ;;  %v3364_v59 = vld [vmem:[%s4264_s8 + $0x10] sm:$0xff] }
 0x282   : > { %vm1573_vm5 = vcmp.ge.f32.partialorder %v1561_v15, 0.0  ;;  %v1582_v18 = vmul.f32 %v3901_v63, %v1561_v15  ;;  %v3372_v60 = vld [vmem:[%s4264_s8 + $0x50] sm:$0xff] }
 0x284   : > { %v1590_v62 = vsel %vm1573_vm5, %v1561_v15, %v1582_v18  ;;  %v3371_v15 = vld [vmem:[%s4264_s8 + $0x48] sm:$0xff]  ;;  %v3370_v18 = vld [vmem:[%s4264_s8 + $0x40] sm:$0xff] }
 0x285   : > { %v1882_v1 = vrot.slane %v1590_v62, 1  ;;  %v1707_v14 = vrot.slane %v1590_v62, 7  ;;  %2171 = vmatpush.bf16.msra.mxu3 %v3374_v47 }
 0x287   : > { %v1885_v16 = vsel %vm1023_vm3, %v1881_v8, %v1882_v1  ;;  %v1710_v5 = vsel %vm789_vm1, %v1706_v19, %v1707_v14  ;;  %v3366_v19 = vld [vmem:[%s4264_s8 + $0x20] sm:$0xff]  ;;  %v3363_v8 = vld [vmem:[%s4264_s8 + $0x8] sm:$0xff] }
 0x288   : > { %v1905_v24 = vsel %vm1897_vm6, 0.0, %v1885_v16  ;;  %v1731_v12 = vsel %vm3994_vm10, 0.0, %v1710_v5 }
 0x289   : > { %v1563_v27 = vpop.f32.mrf.mxu1  ;;  %v1919_v28 = vpack.c.bf16 %v1905_v24, %v1904_v20  ;;  %2172 = vmatpush.bf16.msra.mxu3 %v3373_v49 }
 0x28a   : > { %vm1574_vm8 = vcmp.ge.f32.partialorder %v1563_v27, 0.0  ;;  %v1583_v30 = vmul.f32 %v3901_v63, %v1563_v27 }
 0x28b   : > { %3084 = vmatmul.msk.bf16.gmra.mxu1 %vm1769_vm7, %v1919_v28 }
 0x28c   : > { %v1591_v32 = vsel %vm1574_vm8, %v1563_v27, %v1583_v30 }
 0x28d   : > { %v1708_v35 = vrot.slane %v1591_v32, 7  ;;  %v1883_v36 = vrot.slane %v1591_v32, 1  ;;  %v1604_v38 = vpack.c.bf16 %v1591_v32, %v1590_v62  ;;  %2173 = vmatpush.bf16.msra.mxu3 %v3372_v60 }
 0x28f   : > { %3057 = vmatmul.msk.bf16.gmra.mxu3 %vm1769_vm7, %v1604_v38  ;;  %v1716_v40 = vsel %vm789_vm1, %v1708_v35, %v1701_v25  ;;  %v1884_v41 = vsel %vm1023_vm3, %v1882_v1, %v1883_v36  ;;  %v1891_v10 = vsel %vm1023_vm3, %v1883_v36, %v1876_v21  ;;  %v1709_v43 = vsel %vm789_vm1, %v1707_v14, %v1708_v35  ;;  %v3428_v25 = vld [vmem:[%s4263_s7] ss:$0 sm:$0xff] }
 0x290   : > { %v1725_v44 = vsel %vm4000_vm11, 0.0, %v1716_v40  ;;  %v1906_v45 = vsel %vm4004_vm12, 0.0, %v1884_v41  ;;  %v1907_v46 = vsel %vm4008_vm13, 0.0, %v1891_v10  ;;  %v1732_v50 = vsel %vm1724_vm14, 0.0, %v1709_v43 }
 0x291   : > { %v1741_v51 = vpack.c.bf16 %v1726_v39, %v1725_v44  ;;  %v1920_v52 = vpack.c.bf16 %v1907_v46, %v1906_v45  ;;  %v1744_v53 = vpack.c.bf16 %v1732_v50, %v1731_v12  ;;  %v1713_v21 = vsel %vm789_vm1, %v1703_v7, %v1704_v56  ;;  %v3367_v56 = vld [vmem:[%s4264_s8 + $0x28] sm:$0xff]  ;;  %2174 = vmatpush.bf16.msra.mxu3 %v3371_v15 }
 0x292   : > { %v1728_v55 = vsel %vm1720_vm15, 0.0, %v1713_v21  ;;  %2076 = vmatpush.bf16.msra.mxu2 %v3367_v56 }
 0x293   : > { %3034 = vmatmul.msk.bf16.vlgmr.msrb.gmra.mxu2 %vm1769_vm7, %v1741_v51  ;;  %v1742_v58 = vpack.c.bf16 %v1728_v55, %v1727_v57 }
 0x295   : > { %2175 = vmatpush.bf16.msra.mxu3 %v3370_v18 }
 0x296   : > { %2077 = vmatpush.bf16.msra.mxu2 %v3366_v19 }
 0x29a   : > { %2078 = vmatpush.bf16.msra.mxu2 %v3365_v48 }
 0x29b   : > { %3085 = vmatmul.msk.bf16.gmra.mxu1 %vm1769_vm7, %v1920_v52 }
 0x29e   : > { %2079 = vmatpush.bf16.msra.mxu2 %v3364_v59 }
 0x2a2   : > { %2080 = vmatpush.bf16.msra.mxu2 %v3363_v8 }
 0x2a3   : > { %3035 = vmatmul.msk.bf16.gmra.mxu2 %vm1769_vm7, %v1742_v58 }
 0x2b3   : > { %3036 = vmatmul.msk.bf16.gmra.mxu2 %vm1769_vm7, %v1743_v61  ;;  %v3362_v61 = vld [vmem:[%s4264_s8] sm:$0xff] }
 0x2b4   : > { %2081 = vmatpush.bf16.msra.mxu2 %v3362_v61 }
 0x2c3   : > { %3037 = vmatmul.msk.bf16.gmra.mxu2 %vm1769_vm7, %v1744_v53 }
 0x2e2   : > { %v1856_v62 = vpop.f32.mrf.mxu3 }
 0x2e8   : > { %v1966_v1 = vpop.f32.mrf.mxu1 }
 0x2ea   : > { %v1858_v2 = vpop.f32.mrf.mxu3 }
 0x2f0   : > { %v1968_v13 = vpop.f32.mrf.mxu1 }
 0x2f2   : > { %v1861_v16 = vpop.f32.mrf.mxu3 }
 0x2f8   : > { %v1971_v17 = vpop.f32.mrf.mxu1 }
 0x2fa   : > { %v1863_v5 = vpop.f32.mrf.mxu3 }
 0x300   : > { %v1973_v32 = vpop.f32.mrf.mxu1 }
 0x302   : > { %v1866_v36 = vpop.f32.mrf.mxu3 }
 0x308   : > { %v1976_v39 = vpop.f32.mrf.mxu1 }
 0x30a   : > { %v1868_v43 = vpop.f32.mrf.mxu3 }
 0x310   : > { %v1978_v45 = vpop.f32.mrf.mxu1 }
 0x312   : > { %v1871_v21 = vpop.f32.mrf.mxu3 }
 0x316   : > { %v1791_v11 = vpop.f32.mrf.mxu2 }
 0x317   : > { %v1857_v14 = vadd.f32 %v1856_v62, %v1791_v11 }
 0x318   : > { %v1981_v55 = vpop.f32.mrf.mxu1 }
 0x319   : > { %v1986_v24 = vadd.f32 %v1966_v1, %v1857_v14 }
 0x31a   : > { %v1873_v23 = vpop.f32.mrf.mxu3 }
 0x31b   : > { %v1998_v30 = vadd.f32 %v3428_v25, %v1986_v24 }
 0x31e   : > { %v1793_v20 = vpop.f32.mrf.mxu2 }
 0x31f   : > { %v1859_v27 = vadd.f32 %v1858_v2, %v1793_v20 }
 0x320   : > { %v1983_v56 = vpop.f32.mrf.mxu1 }
 0x321   : > { %v1987_v28 = vadd.f32 %v1968_v13, %v1859_v27 }
 0x323   : > { %v1999_v3 = vadd.f32 %v3428_v25, %v1987_v28 }
 0x325   : > { %v2022_v9 = vpack.c.bf16 %v1999_v3, %v1998_v30 }
 0x326   : > { %v1796_v31 = vpop.f32.mrf.mxu2 }
 0x327   : > { %2082 = vmatmul.bf16.vlgmr.msra.gmra.mxu2 %v2022_v9  ;;  %2176 = vmatmul.bf16.vlgmr.msra.gmra.mxu3 %v2022_v9  ;;  %v1862_v63 = vadd.f32 %v1861_v16, %v1796_v31 }
 0x329   : > { %v1988_v22 = vadd.f32 %v1971_v17, %v1862_v63 }
 0x32b   : > { %v2000_v12 = vadd.f32 %v3428_v25, %v1988_v22 }
 0x32e   : > { %v1798_v33 = vpop.f32.mrf.mxu2 }
 0x32f   : > { %v1864_v35 = vadd.f32 %v1863_v5, %v1798_v33 }
 0x331   : > { %v1989_v38 = vadd.f32 %v1973_v32, %v1864_v35 }
 0x333   : > { %v2001_v40 = vadd.f32 %v3428_v25, %v1989_v38 }
 0x335   : > { %v2023_v41 = vpack.c.bf16 %v2001_v40, %v2000_v12 }
 0x336   : > { %v1801_v10 = vpop.f32.mrf.mxu2 }
 0x337   : > { %2087 = vmatmul.bf16.gmra.mxu2 %v2023_v41  ;;  %2181 = vmatmul.bf16.gmra.mxu3 %v2023_v41  ;;  %v1867_v44 = vadd.f32 %v1866_v36, %v1801_v10 }
 0x339   : > { %v1990_v50 = vadd.f32 %v1976_v39, %v1867_v44 }
 0x33b   : > { %v2002_v53 = vadd.f32 %v3428_v25, %v1990_v50 }
 0x33e   : > { %v1803_v46 = vpop.f32.mrf.mxu2 }
 0x33f   : > { %v1869_v51 = vadd.f32 %v1868_v43, %v1803_v46 }
 0x341   : > { %v1991_v52 = vadd.f32 %v1978_v45, %v1869_v51 }
 0x343   : > { %v2003_v7 = vadd.f32 %v3428_v25, %v1991_v52 }
 0x345   : > { %v2024_v54 = vpack.c.bf16 %v2003_v7, %v2002_v53 }
 0x346   : > { %v1806_v57 = vpop.f32.mrf.mxu2 }
 0x347   : > { %2092 = vmatmul.bf16.gmra.mxu2 %v2024_v54  ;;  %2186 = vmatmul.bf16.gmra.mxu3 %v2024_v54  ;;  %v1872_v58 = vadd.f32 %v1871_v21, %v1806_v57 }
 0x349   : > { %v1992_v0 = vadd.f32 %v1981_v55, %v1872_v58 }
 0x34b   : > { %v2004_v19 = vadd.f32 %v3428_v25, %v1992_v0  ;;  %v3379_v0 = vld [vmem:[%s4265_s9 + $0x8] sm:$0xff] }
 0x34e   : > { %v1808_v37 = vpop.f32.mrf.mxu2 }
 0x34f   : > { %v1874_v42 = vadd.f32 %v1873_v23, %v1808_v37  ;;  %v3378_v37 = vld [vmem:[%s4265_s9] sm:$0xff] }
 0x351   : > { %v1993_v34 = vadd.f32 %v1983_v56, %v1874_v42  ;;  %v3383_v42 = vld [vmem:[%s4266_s10 + $0x38] sm:$0xff]  ;;  %v3382_v56 = vld [vmem:[%s4266_s10 + $0x30] sm:$0xff] }
 0x352   : > { %2454 = vmatpush.bf16.msrb.mxu2 %v3383_v42  ;;  %v3395_v42 = vld [vmem:[%s4268_s12 + $0x18] sm:$0xff] }
 0x353   : > { %v2005_v47 = vadd.f32 %v3428_v25, %v1993_v34  ;;  %v3381_v34 = vld [vmem:[%s4266_s10 + $0x28] sm:$0xff] }
 0x355   : > { %v2025_v48 = vpack.c.bf16 %v2005_v47, %v2004_v19  ;;  %v3391_v19 = vld [vmem:[%s4266_s10 + $0x58] sm:$0xff]  ;;  %v3380_v47 = vld [vmem:[%s4266_s10 + $0x20] sm:$0xff] }
 0x356   : > { %2455 = vmatpush.bf16.msrb.mxu2 %v3382_v56  ;;  %2530 = vmatpush.bf16.msrb.mxu3 %v3391_v19  ;;  %v3393_v56 = vld [vmem:[%s4268_s12 + $0x8] sm:$0xff] }
 0x357   : > { %2097 = vmatmul.bf16.gmra.mxu2 %v2025_v48  ;;  %2191 = vmatmul.bf16.gmra.mxu3 %v2025_v48  ;;  %v3390_v48 = vld [vmem:[%s4266_s10 + $0x50] sm:$0xff] }
 0x35a   : > { %2456 = vmatpush.bf16.msrb.mxu2 %v3381_v34  ;;  %2531 = vmatpush.bf16.msrb.mxu3 %v3390_v48  ;;  %v3392_v34 = vld [vmem:[%s4268_s12] sm:$0xff] }
 0x35e   : > { %2457 = vmatpush.bf16.msrb.mxu2 %v3380_v47 }
 0x3aa   : > { %v2083_v49 = vpop.f32.mrf.mxu2  ;;  %v2177_v59 = vpop.f32.mrf.mxu3 }
 0x3ab   : > { %v2197_v20 = vmax.f32 %v2083_v49, %v2177_v59  ;;  %v3387_v49 = vld [vmem:[%s4266_s10 + $0x18] sm:$0xff]  ;;  %v3389_v59 = vld [vmem:[%s4266_s10 + $0x48] sm:$0xff] }
 0x3ac   : > { %2405 = vmatpush.bf16.msrb.mxu1 %v3387_v49  ;;  %2532 = vmatpush.bf16.msrb.mxu3 %v3389_v59 }
 0x3ad   : > { %v2205_v9 = vrot.slane %v2197_v20, 1 }
 0x3b2   : > { %v2085_v60 = vpop.f32.mrf.mxu2  ;;  %v2179_v8 = vpop.f32.mrf.mxu3 }
 0x3b3   : > { %v2198_v12 = vmax.f32 %v2085_v60, %v2179_v8  ;;  %v3386_v60 = vld [vmem:[%s4266_s10 + $0x10] sm:$0xff]  ;;  %v3388_v8 = vld [vmem:[%s4266_s10 + $0x40] sm:$0xff] }
 0x3b4   : > { %2406 = vmatpush.bf16.msrb.mxu1 %v3386_v60  ;;  %2533 = vmatpush.bf16.msrb.mxu3 %v3388_v8  ;;  %v3429_v8 = vld [vmem:[%s4267_s11] ss:$0 sm:$0xff] }
 0x3b5   : > { %v2206_v50 = vrot.slane %v2198_v12, 1 }
 0x3b7   : > { %v2219_v54 = vsel %vm1023_vm3, %v2205_v9, %v2206_v50 }
 0x3b8   : > { %v2221_v58 = vmax.f32 %v2197_v20, %v2219_v54 }
 0x3ba   : > { %v2088_v15 = vpop.f32.mrf.mxu2  ;;  %v2182_v61 = vpop.f32.mrf.mxu3 }
 0x3bb   : > { %v2199_v63 = vmax.f32 %v2088_v15, %v2182_v61  ;;  %v3385_v15 = vld [vmem:[%s4266_s10 + $0x8] sm:$0xff]  ;;  %v3384_v61 = vld [vmem:[%s4266_s10] sm:$0xff] }
 0x3bc   : > { %2407 = vmatpush.bf16.msrb.mxu1 %v3385_v15 }
 0x3bd   : > { %v2207_v44 = vrot.slane %v2199_v63, 1 }
 0x3bf   : > { %v2218_v7 = vsel %vm1023_vm3, %v2206_v50, %v2207_v44 }
 0x3c0   : > { %v2222_v57 = vmax.f32 %v2198_v12, %v2218_v7  ;;  %2408 = vmatpush.bf16.msrb.mxu1 %v3384_v61 }
 0x3c2   : > { %v2090_v18 = vpop.f32.mrf.mxu2  ;;  %v2184_v62 = vpop.f32.mrf.mxu3  ;;  %v2233_v23 = vpack.c.bf16 %v2222_v57, %v2221_v58 }
 0x3c3   : > { %v2200_v5 = vmax.f32 %v2090_v18, %v2184_v62  ;;  %v2277_v62 = vstv %s3176_s23 }
 0x3c5   : > { %v2208_v40 = vrot.slane %v2200_v5, 1 }
 0x3c7   : > { %v2217_v51 = vsel %vm1023_vm3, %v2207_v44, %v2208_v40 }
 0x3c8   : > { %v2223_v21 = vmax.f32 %v2199_v63, %v2217_v51 }
 0x3ca   : > { %v2093_v1 = vpop.f32.mrf.mxu2  ;;  %v2187_v2 = vpop.f32.mrf.mxu3 }
 0x3cb   : > { %v2201_v28 = vmax.f32 %v2093_v1, %v2187_v2 }
 0x3cd   : > { %v2209_v33 = vrot.slane %v2201_v28, 1 }
 0x3cf   : > { %v2216_v45 = vsel %vm1023_vm3, %v2208_v40, %v2209_v33 }
 0x3d0   : > { %v2224_v53 = vmax.f32 %v2200_v5, %v2216_v45  ;;  %v2322_v45 = vand.u32 3, %v3617_v29 }
 0x3d2   : > { %v2095_v13 = vpop.f32.mrf.mxu2  ;;  %v2189_v11 = vpop.f32.mrf.mxu3  ;;  %v2234_v55 = vpack.c.bf16 %v2224_v53, %v2223_v21  ;;  %vm2480_vm13 = vcmp.eq.s32.totalorder %v2322_v45, 3  ;;  %vm2356_vm14 = vcmp.eq.s32.totalorder %v2322_v45, 0 }
 0x3d3   : > { %v2202_v24 = vmax.f32 %v2095_v13, %v2189_v11 }
 0x3d5   : > { %v2210_v31 = vrot.slane %v2202_v24, 1 }
 0x3d7   : > { %v2215_v41 = vsel %vm1023_vm3, %v2209_v33, %v2210_v31 }
 0x3d8   : > { %v2225_v46 = vmax.f32 %v2201_v28, %v2215_v41  ;;  %v2308_v28 = vand.u32 3, %v3572_v6 }
 0x3da   : > { %v2098_v14 = vpop.f32.mrf.mxu2  ;;  %v2192_v16 = vpop.f32.mrf.mxu3  ;;  %vm2478_vm8 = vcmp.eq.s32.totalorder %v2308_v28, 3  ;;  %vm2354_vm10 = vcmp.eq.s32.totalorder %v2308_v28, 0 }
 0x3db   : > { %v2203_v17 = vmax.f32 %v2098_v14, %v2192_v16 }
 0x3dd   : > { %v2211_v30 = vrot.slane %v2203_v17, 1 }
 0x3df   : > { %v2214_v36 = vsel %vm1023_vm3, %v2210_v31, %v2211_v30  ;;  %v3398_v31 = vld [vmem:[%s4268_s12 + $0x30] sm:$0xff] }
 0x3e0   : > { %v2226_v43 = vmax.f32 %v2202_v24, %v2214_v36  ;;  %v3397_v36 = vld [vmem:[%s4268_s12 + $0x28] sm:$0xff] }
 0x3e2   : > { %v2100_v25 = vpop.f32.mrf.mxu2  ;;  %v2194_v27 = vpop.f32.mrf.mxu3  ;;  %v2235_v52 = vpack.c.bf16 %v2226_v43, %v2225_v46 }
 0x3e3   : > { %v2204_v3 = vmax.f32 %v2100_v25, %v2194_v27 }
 0x3e5   : > { %v2212_v32 = vrot.slane %v2204_v3, 1 }
 0x3e7   : > { %v2213_v22 = vsel %vm1023_vm3, %v2211_v30, %v2212_v32  ;;  %v2220_v35 = vsel %vm1023_vm3, %v2212_v32, %v2205_v9  ;;  %v3399_v30 = vld [vmem:[%s4268_s12 + $0x38] sm:$0xff] }
 0x3e8   : > { %v2227_v38 = vmax.f32 %v2203_v17, %v2213_v22  ;;  %v2228_v39 = vmax.f32 %v2204_v3, %v2220_v35  ;;  %v2301_v17 = vand.u32 3, %v3568_v4  ;;  %v3394_v4 = vld [vmem:[%s4268_s12 + $0x10] sm:$0xff] }
 0x3ea   : > { %v2236_v10 = vpack.c.bf16 %v2228_v39, %v2227_v38  ;;  %vm2477_vm6 = vcmp.eq.s32.totalorder %v2301_v17, 3  ;;  %vm2353_vm11 = vcmp.eq.s32.totalorder %v2301_v17, 0 }
 0x3ec   : > { %2257 = vmatpush.bf16.msra.mxu0 %v2236_v10 }
 0x3f0   : > { %2258 = vmatpush.bf16.msra.mxu0 %v2235_v52  ;;  %v2315_v52 = vand.u32 3, %v3614_v26 }
 0x3f2   : > { %vm2479_vm12 = vcmp.eq.s32.totalorder %v2315_v52, 3  ;;  %vm2355_vm15 = vcmp.eq.s32.totalorder %v2315_v52, 0  ;;  %v3406_v52 = vld [vmem:[%s4270_s14 + $0x30] sm:$0xff] }
 0x3f4   : > { %2259 = vmatpush.bf16.msra.mxu0 %v2234_v55 }
 0x3f8   : > { %2260 = vmatpush.bf16.msra.mxu0 %v2233_v23 }
 0x3fb   : > { %3174 = vmatmul.msk.bf16.vlgmr.msra.gmra.mxu0 %vm1769_vm7, %v3378_v37 }
 0x3fc   : > { %2637 = vmatpush.bf16.msrb.mxu0 %v3399_v30 }
 0x400   : > { %2638 = vmatpush.bf16.msrb.mxu0 %v3398_v31 }
 0x404   : > { %2639 = vmatpush.bf16.msrb.mxu0 %v3397_v36 }
 0x40b   : > { %3175 = vmatmul.msk.bf16.gmra.mxu0 %vm1769_vm7, %v3379_v0  ;;  %v3396_v0 = vld [vmem:[%s4268_s12 + $0x20] sm:$0xff] }
 0x40c   : > { %2640 = vmatpush.bf16.msrb.mxu0 %v3396_v0 }
 0x410   : > { %2641 = vmatpush.bf16.msrb.mxu0 %v3395_v42 }
 0x414   : > { %2642 = vmatpush.bf16.msrb.mxu0 %v3394_v4 }
 0x418   : > { %2643 = vmatpush.bf16.msrb.mxu0 %v3393_v56 }
 0x41c   : > { %2644 = vmatpush.bf16.msrb.mxu0 %v3392_v34 }
 0x478   : > { %v2262_v18 = vpop.f32.mrf.mxu0 }
 0x479   : > { %v2278_v1 = vmul.f32 %v2277_v62, %v2262_v18  ;;  %vm2273_vm4 = vcmp.ge.f32.partialorder %v2262_v18, 0.0 }
 0x47b   : > { %v2282_v11 = vsel %vm2273_vm4, %v2262_v18, %v2278_v1  ;;  %v2562_v1 = vstv %s3247_s29 }
 0x47c   : > { %v2469_v27 = vrot.slane %v2282_v11, 1  ;;  %v2345_v39 = vrot.slane %v2282_v11, 7 }
 0x480   : > { %v2264_v2 = vpop.f32.mrf.mxu0 }
 0x481   : > { %vm2274_vm5 = vcmp.ge.f32.partialorder %v2264_v2, 0.0  ;;  %v2279_v13 = vmul.f32 %v2277_v62, %v2264_v2 }
 0x483   : > { %v2283_v14 = vsel %vm2274_vm5, %v2264_v2, %v2279_v13  ;;  %vm2659_vm5 = vcmask 261120  }
 0x484   : > { %v2295_v16 = vpack.c.bf16 %v2283_v14, %v2282_v11  ;;  %v2470_v20 = vrot.slane %v2283_v14, 1  ;;  %v2346_v33 = vrot.slane %v2283_v14, 7 }
 0x486   : > { %3219 = vmatmul.msk.bf16.vlgmr.msrb.gmra.mxu2 %vm1769_vm7, %v2295_v16  ;;  %v2475_v9 = vsel %vm1023_vm3, %v2469_v27, %v2470_v20  ;;  %v2351_v40 = vsel %vm789_vm1, %v2345_v39, %v2346_v33 }
 0x487   : > { %v2481_v6 = vsel %vm2477_vm6, 0.0, %v2475_v9  ;;  %v2358_v46 = vsel %vm2354_vm10, 0.0, %v2351_v40 }
 0x488   : > { %v2267_v24 = vpop.f32.mrf.mxu0 }
 0x489   : > { %vm2275_vm0 = vcmp.ge.f32.partialorder %v2267_v24, 0.0  ;;  %v2280_v25 = vmul.f32 %v2277_v62, %v2267_v24 }
 0x48b   : > { %v2284_v3 = vsel %vm2275_vm0, %v2267_v24, %v2280_v25 }
 0x48c   : > { %v2471_v5 = vrot.slane %v2284_v3, 1  ;;  %v2347_v55 = vrot.slane %v2284_v3, 7 }
 0x48e   : > { %v2474_v32 = vsel %vm1023_vm3, %v2470_v20, %v2471_v5  ;;  %v2350_v26 = vsel %vm789_vm1, %v2346_v33, %v2347_v55 }
 0x48f   : > { %v2482_v63 = vsel %vm2478_vm8, 0.0, %v2474_v32  ;;  %v2359_v23 = vsel %vm2355_vm15, 0.0, %v2350_v26 }
 0x490   : > { %v2494_v22 = vpack.c.bf16 %v2482_v63, %v2481_v6  ;;  %v2269_v35 = vpop.f32.mrf.mxu0 }
 0x491   : > { %vm2276_vm9 = vcmp.ge.f32.partialorder %v2269_v35, 0.0  ;;  %v2281_v38 = vmul.f32 %v2277_v62, %v2269_v35 }
 0x492   : > { %3245 = vmatmul.msk.bf16.vlgmr.msrb.gmra.mxu3 %vm1769_vm7, %v2494_v22 }
 0x493   : > { %v2285_v12 = vsel %vm2276_vm9, %v2269_v35, %v2281_v38 }
 0x494   : > { %v2296_v41 = vpack.c.bf16 %v2285_v12, %v2284_v3  ;;  %v2348_v10 = vrot.slane %v2285_v12, 7  ;;  %v2472_v44 = vrot.slane %v2285_v12, 1 }
 0x496   : > { %v2352_v43 = vsel %vm789_vm1, %v2348_v10, %v2345_v39  ;;  %3220 = vmatmul.msk.bf16.gmra.mxu2 %vm1769_vm7, %v2296_v41  ;;  %v2473_v53 = vsel %vm1023_vm3, %v2471_v5, %v2472_v44  ;;  %v2476_v7 = vsel %vm1023_vm3, %v2472_v44, %v2469_v27  ;;  %v2349_v29 = vsel %vm789_vm1, %v2347_v55, %v2348_v10  ;;  %v3407_v44 = vld [vmem:[%s4270_s14 + $0x38] sm:$0xff] }
 0x497   : > { %v2357_v50 = vsel %vm2353_vm11, 0.0, %v2352_v43  ;;  %v2483_v21 = vsel %vm2479_vm12, 0.0, %v2473_v53  ;;  %v2484_v54 = vsel %vm2480_vm13, 0.0, %v2476_v7  ;;  %v2360_v58 = vsel %vm2356_vm14, 0.0, %v2349_v29  ;;  %v3403_v43 = vld [vmem:[%s4270_s14 + $0x18] sm:$0xff]  ;;  %v3401_v53 = vld [vmem:[%s4270_s14 + $0x8] sm:$0xff] }
 0x498   : > { %v2369_v51 = vpack.c.bf16 %v2358_v46, %v2357_v50  ;;  %v2495_v57 = vpack.c.bf16 %v2484_v54, %v2483_v21  ;;  %v2370_v37 = vpack.c.bf16 %v2360_v58, %v2359_v23  ;;  %v2656_v46 = vld [vmem:[%s4269_s13] sm:$0xf]  ;;  %v3281_v50 = vld [vmem:[%s4269_s13 + $0x4] sm:$0xf]  ;;  %v3405_v21 = vld [vmem:[%s4270_s14 + $0x28] sm:$0xff] }
 0x499   : > { %v3400_v7 = vld [vmem:[%s4270_s14] sm:$0xff] }
 0x49a   : > { %3201 = vmatmul.msk.bf16.vlgmr.msrb.gmra.mxu1 %vm1769_vm7, %v2369_v51  ;;  %v3402_v51 = vld [vmem:[%s4270_s14 + $0x10] sm:$0xff]  ;;  %v3404_v54 = vld [vmem:[%s4270_s14 + $0x20] sm:$0xff] }
 0x4a2   : > { %3246 = vmatmul.msk.bf16.gmra.mxu3 %vm1769_vm7, %v2495_v57 }
 0x4aa   : > { %3202 = vmatmul.msk.bf16.gmra.mxu1 %vm1769_vm7, %v2370_v37  ;;  %v3430_v37 = vld [vmem:[%s4271_s15] ss:$0 sm:$0xff] }
 0x509   : > { %v2459_v19 = vpop.f32.mrf.mxu2 }
 0x511   : > { %v2461_v59 = vpop.f32.mrf.mxu2 }
 0x515   : > { %v2535_v47 = vpop.f32.mrf.mxu3 }
 0x517   : > { %v2410_v48 = vpop.f32.mrf.mxu1 }
 0x518   : > { %v2460_v49 = vadd.f32 %v2459_v19, %v2410_v48 }
 0x519   : > { %v2464_v14 = vpop.f32.mrf.mxu2 }
 0x51a   : > { %v2545_v60 = vadd.f32 %v2535_v47, %v2460_v49 }
 0x51c   : > { %v2553_v18 = vadd.f32 %v3429_v8, %v2545_v60 }
 0x51d   : > { %v2537_v15 = vpop.f32.mrf.mxu3 }
 0x51e   : > { %v2563_v13 = vmul.f32 %v2562_v1, %v2553_v18  ;;  %vm2558_vm1 = vcmp.ge.f32.partialorder %v2553_v18, 0.0 }
 0x51f   : > { %v2412_v61 = vpop.f32.mrf.mxu1 }
 0x520   : > { %v2462_v62 = vadd.f32 %v2461_v59, %v2412_v61  ;;  %v2567_v24 = vsel %vm2558_vm1, %v2553_v18, %v2563_v13 }
 0x521   : > { %v2466_v9 = vpop.f32.mrf.mxu2 }
 0x522   : > { %v2546_v2 = vadd.f32 %v2537_v15, %v2462_v62 }
 0x524   : > { %v2554_v11 = vadd.f32 %v3429_v8, %v2546_v2 }
 0x525   : > { %v2540_v20 = vpop.f32.mrf.mxu3 }
 0x526   : > { %vm2559_vm3 = vcmp.ge.f32.partialorder %v2554_v11, 0.0  ;;  %v2564_v16 = vmul.f32 %v2562_v1, %v2554_v11 }
 0x527   : > { %v2415_v17 = vpop.f32.mrf.mxu1 }
 0x528   : > { %v2568_v25 = vsel %vm2559_vm3, %v2554_v11, %v2564_v16  ;;  %v2465_v27 = vadd.f32 %v2464_v14, %v2415_v17 }
 0x529   : > { %v2587_v28 = vpack.c.bf16 %v2568_v25, %v2567_v24 }
 0x52a   : > { %v2547_v30 = vadd.f32 %v2540_v20, %v2465_v27 }
 0x52b   : > { %2645 = vmatmul.bf16.vlgmr.msrb.gmra.mxu0 %v2587_v28 }
 0x52c   : > { %v2555_v5 = vadd.f32 %v3429_v8, %v2547_v30 }
 0x52d   : > { %v2542_v32 = vpop.f32.mrf.mxu3 }
 0x52e   : > { %v2565_v63 = vmul.f32 %v2562_v1, %v2555_v5  ;;  %vm2560_vm2 = vcmp.ge.f32.partialorder %v2555_v5, 0.0 }
 0x52f   : > { %v2417_v3 = vpop.f32.mrf.mxu1 }
 0x530   : > { %v2467_v31 = vadd.f32 %v2466_v9, %v2417_v3  ;;  %v2569_v35 = vsel %vm2560_vm2, %v2555_v5, %v2565_v63 }
 0x532   : > { %v2548_v6 = vadd.f32 %v2542_v32, %v2467_v31 }
 0x534   : > { %v2556_v33 = vadd.f32 %v3429_v8, %v2548_v6 }
 0x536   : > { %vm2561_vm4 = vcmp.ge.f32.partialorder %v2556_v33, 0.0  ;;  %v2566_v22 = vmul.f32 %v2562_v1, %v2556_v33 }
 0x538   : > { %v2570_v36 = vsel %vm2561_vm4, %v2556_v33, %v2566_v22 }
 0x539   : > { %v2588_v38 = vpack.c.bf16 %v2570_v36, %v2569_v35 }
 0x53b   : > { %2650 = vmatmul.bf16.gmra.mxu0 %v2588_v38 }
 0x5a8   : > { %v2646_v39 = vpop.f32.mrf.mxu0 }
 0x5b0   : > { %v2648_v12 = vpop.f32.mrf.mxu0 }
 0x5b1   : > { %v2657_v45 = vpack.c.bf16 %v2648_v12, %v2646_v39 }
 0x5b8   : > { %v2651_v40 = vpop.f32.mrf.mxu0 }
 0x5c0   : > { %v2653_v41 = vpop.f32.mrf.mxu0 }
 0x5c1   : > { %v2658_v10 = vpack.c.bf16 %v2653_v41, %v2651_v40 }
 0x5c3   : > { %2669 = vmatpush.bf16.msra.mxu1 %v2658_v10  ;;  %2687 = vmatpush.bf16.msra.mxu2 %v2658_v10 }
 0x5c7   : > { %2670 = vmatpush.bf16.msra.mxu1 %v2657_v45  ;;  %2688 = vmatpush.bf16.msra.mxu2 %v2657_v45 }
 0x5ca   : > { %3280 = vmatmul.msk.bf16.vlgmr.msra.gmra.mxu1 %vm2659_vm5, %v2656_v46  ;;  %3282 = vmatmul.msk.bf16.vlgmr.msra.gmra.mxu2 %vm2659_vm5, %v3281_v50 }
 0x5cb   : > { %2784 = vmatpush.bf16.msrb.mxu2 %v3403_v43  ;;  %2744 = vmatpush.bf16.msrb.mxu1 %v3407_v44 }
 0x5cf   : > { %2785 = vmatpush.bf16.msrb.mxu2 %v3402_v51  ;;  %2745 = vmatpush.bf16.msrb.mxu1 %v3406_v52 }
 0x5d3   : > { %2786 = vmatpush.bf16.msrb.mxu2 %v3401_v53  ;;  %2746 = vmatpush.bf16.msrb.mxu1 %v3405_v21 }
 0x5d7   : > { %2787 = vmatpush.bf16.msrb.mxu2 %v3400_v7  ;;  %2747 = vmatpush.bf16.msrb.mxu1 %v3404_v54 }
 0x647   : > { %v2672_v55 = vpop.f32.mrf.mxu1 }
 0x648   : > { %v2702_v57 = vpack.c.bf16 %v2672_v55, %v2672_v55 }
 0x64a   : > { %3324 = vmatmul.msk.bf16.vlgmr.msrb.gmra.mxu2 %vm1769_vm7, %v2702_v57 }
 0x64d   : > { %v2690_v29 = vpop.f32.mrf.mxu2 }
 0x64e   : > { %v2712_v26 = vpack.c.bf16 %v2690_v29, %v2690_v29 }
 0x64f   : > { %v2674_v58 = vpop.f32.mrf.mxu1 }
 0x650   : > { %3307 = vmatmul.msk.bf16.vlgmr.msrb.gmra.mxu1 %vm1769_vm7, %v2712_v26 }
 0x655   : > { %v2692_v23 = vpop.f32.mrf.mxu2 }
 0x6cd   : > { %v2749_v0 = vpop.f32.mrf.mxu1  ;;  %v2789_v42 = vpop.f32.mrf.mxu2 }
 0x6ce   : > { %v2790_v4 = vadd.f32 %v2789_v42, %v2749_v0 }
 0x6d0   : > { %v2797_v56 = vadd.f32 %v3430_v37, %v2790_v4 }
 0x6d2   : > { %2798 = vst [vmem:[%s535_s0] sm:$0xff] %v2797_v56 }
 0x6d5   : > { %v2751_v34 = vpop.f32.mrf.mxu1  ;;  %v2791_v19 = vpop.f32.mrf.mxu2 }
 0x6d6 PF: > { %s27_s21 = sadd.s32 1, %s3456_s21  }
 0x6d7   : > { %p24_p8 = scmp.ge.s32.totalorder %s27_s21, 6  }
 0x6d9   :  { %26 = sbr.rel (!%p24_p8) target bundleno = 3 (0x3), region = 129 }
 0x6de   :  { %2818 = vsyncpa [#allocation3], 1 }
 0x6df   :  { %2820 = vsyncpa [#allocation3 + $0x1], 1 }

</bundles_post_ra>
